<compile_context>
chip_gen: v6e
topology: v6e:2x2x1
jax: 0.10.0
libtpu: 0.0.40
codegen_flags: <defaults>
</compile_context>

<pallas_src>
import jax
import jax.numpy as jnp
import numpy as np
from jax import lax
from jax.experimental import pallas as pl
from jax.experimental.pallas import tpu as pltpu


def _round_up(x, m):
    return (x + m - 1) // m * m


def _lse_max(x, axis):
    mx = jnp.max(x, axis=axis, keepdims=True)
    return jnp.log(jnp.sum(jnp.exp(x - mx), axis=axis, keepdims=True)) + mx


def _lse(x, axis):
    # After the first normalization every entry is <= 0, so sum(exp(.)) <= n
    # and cannot overflow; dropping the max-subtract removes one XLU reduce and
    # one broadcast-subtract per call.
    # TODO(synk): for very small tau (entries < ~-88 in f32) this can underflow
    # to -inf; fall back to _lse_max (or exp-domain Sinkhorn) in that regime.
    return jnp.log(jnp.sum(jnp.exp(x), axis=axis, keepdims=True))


def _make_kernel(l, tau, n_iter, mxu_dtype):
    scale = l / tau
    f32 = jnp.float32

    def dot(a, b):   # a @ b
        return lax.dot_general(a, b, (((1,), (0,)), ((), ())),
                               preferred_element_type=f32)

    def dotT(a, b):  # a @ b.T  (consumes b as stored; no materialized transpose)
        return lax.dot_general(a, b, (((1,), (1,)), ((), ())),
                               preferred_element_type=f32)

    def kernel(p0_ref, p1_ref, w1_ref, b1_ref, w2_ref, b2_ref, w3_ref, b3_ref,
               x_ref, o_ref, w1p_s, w2p_s, w3p_s, b1p_s, b2p_s):

        # ---- 1+2) Sinkhorn + re-basin: computed once, persisted in scratch.
        @pl.when(pl.program_id(0) == 0)
        def _prepare():
            lp0 = p0_ref[...].astype(f32) * scale
            lp1 = p1_ref[...].astype(f32) * scale

            # First pass keeps the max-subtraction (raw p*l/tau may be large);
            # the two independent chains are interleaved so their XLU/EUP work
            # overlaps.
            lp0 = lp0 - _lse_max(lp0, -2)      # column normalization
            lp1 = lp1 - _lse_max(lp1, -2)
            lp0 = lp0 - _lse(lp0, -1)          # row normalization
            lp1 = lp1 - _lse(lp1, -1)

            def body(_, carry):
                a, b = carry
                a = a - _lse(a, -2)
                b = b - _lse(b, -2)
                a = a - _lse(a, -1)
                b = b - _lse(b, -1)
                return a, b

            lp0, lp1 = lax.fori_loop(0, n_iter - 1, body, (lp0, lp1))
            P0 = jnp.exp(lp0)                  # f32 soft permutations
            P1 = jnp.exp(lp1)

            # Weight re-basin on the MXU in bf16 (f32 accumulation).
            P0m = P0.astype(mxu_dtype)
            P1m = P1.astype(mxu_dtype)
            w1 = w1_ref[...].astype(mxu_dtype)
            w2 = w2_ref[...].astype(mxu_dtype)
            w3 = w3_ref[...].astype(mxu_dtype)

            w1p_s[...] = dot(P0m, w1).astype(mxu_dtype)          # P0 @ W1
            w2_tmp = dot(P1m, w2).astype(mxu_dtype)              # P1 @ W2
            w2p_s[...] = dotT(w2_tmp, P0m).astype(mxu_dtype)     # ... @ P0^T
            w3p_s[...] = dotT(w3, P1m).astype(mxu_dtype)         # W3 @ P1^T

            # Biases permuted as (1, h) rows, kept in f32 (tiny matmuls).
            b1p_s[...] = dotT(b1_ref[...].astype(f32), P0)       # (P0 @ b1)^T
            b2p_s[...] = dotT(b2_ref[...].astype(f32), P1)       # (P1 @ b2)^T

        # ---- 3) forward of the permuted model on this batch tile.
        x = x_ref[...].astype(mxu_dtype)
        h1 = jnp.maximum(dotT(x, w1p_s[...]) + b1p_s[...], 0.0)                 # x @ W1'^T + b1'
        h2 = jnp.maximum(dotT(h1.astype(mxu_dtype), w2p_s[...]) + b2p_s[...], 0.0)
        y = dotT(h2.astype(mxu_dtype), w3p_s[...]) + b3_ref[...].astype(f32)    # b3 unchanged
        o_ref[...] = y.astype(o_ref.dtype)

    return kernel


def rebasin_forward(params, p_list, x, *, l=1.0, tau=1.0, n_iter=20,
                    block_b=128, mxu_dtype=jnp.bfloat16):
    """RebasinNet.forward (training / 'implicit' / 'mat_mul' branch)."""
    W1, b1, W2, b2, W3, b3 = params
    p0, p1 = p_list
    B, d_in = x.shape
    h = W1.shape[0]
    d_out = W3.shape[0]

    # Lane-dense output: zero-pad d_out to a multiple of 128 (padded rows of W3
    # / entries of b3 are zero), slice the padding off after the call.
    d_out_p = max(_round_up(d_out, 128), 128)
    W3_p = jnp.zeros((d_out_p, h), W3.dtype).at[:d_out].set(W3)
    b3_p = jnp.zeros((1, d_out_p), b3.dtype).at[0, :d_out].set(b3)

    # Batch tiling: sublane-aligned tile, batch zero-padded to a tile multiple.
    tile_b = min(block_b, _round_up(B, 8))
    B_p = _round_up(B, tile_b)
    x_p = jnp.zeros((B_p, d_in), x.dtype).at[:B].set(x)

    # Biases as (1, n) rows so everything in-kernel is 2D.
    b1r = b1.reshape(1, h)
    b2r = b2.reshape(1, h)

    kernel = _make_kernel(l, tau, n_iter, mxu_dtype)

    def fixed(shape):
        nd = len(shape)
        return pl.BlockSpec(shape, lambda i: (0,) * nd)

    # TODO(synk): eval-mode path uses `matching` (Hungarian / LAP) for hard
    # permutations; only the training (Sinkhorn / mat_mul) path is implemented.
    # TODO(synk): permute_batchnorm is a no-op here (the MLP has no BatchNorm).
    # TODO(synk): for v7x megacore, split into a Sinkhorn/re-basin call followed
    # by a batch-"parallel" forward call; the fused single call below must keep
    # the batch axis "arbitrary" because the permuted weights live in scratch.
    out = pl.pallas_call(
        kernel,
        grid=(B_p // tile_b,),
        in_specs=[
            fixed(p0.shape), fixed(p1.shape),
            fixed(W1.shape), fixed(b1r.shape),
            fixed(W2.shape), fixed(b2r.shape),
            fixed(W3_p.shape), fixed(b3_p.shape),
            pl.BlockSpec((tile_b, d_in), lambda i: (i, 0)),
        ],
        out_specs=pl.BlockSpec((tile_b, d_out_p), lambda i: (i, 0)),
        out_shape=jax.ShapeDtypeStruct((B_p, d_out_p), jnp.float32),
        scratch_shapes=[
            pltpu.VMEM((h, d_in), mxu_dtype),      # W1'
            pltpu.VMEM((h, h), mxu_dtype),         # W2'
            pltpu.VMEM((d_out_p, h), mxu_dtype),   # W3' (padded rows = 0)
            pltpu.VMEM((1, h), jnp.float32),       # b1'
            pltpu.VMEM((1, h), jnp.float32),       # b2'
        ],
        compiler_params=pltpu.CompilerParams(
            dimension_semantics=("arbitrary",),
            vmem_limit_bytes=32 * 1024 * 1024,
        ),
    )(p0, p1, W1, b1r, W2, b2r, W3_p, b3_p, x_p)

    return out[:B, :d_out]


# ----------------------------------------------------------------------------
# Pure-JAX reference (for correctness check only)
# ----------------------------------------------------------------------------
def rebasin_forward_ref(params, p_list, x, *, l=1.0, tau=1.0, n_iter=20):
    W1, b1, W2, b2, W3, b3 = params

    def sinkhorn_ref(p):
        log_p = p * (l / tau)
        for _ in range(n_iter):
            log_p = log_p - jax.scipy.special.logsumexp(log_p, axis=-2, keepdims=True)
            log_p = log_p - jax.scipy.special.logsumexp(log_p, axis=-1, keepdims=True)
        return jnp.exp(log_p)

    P0, P1 = sinkhorn_ref(p_list[0]), sinkhorn_ref(p_list[1])
    W1p, b1p = P0 @ W1, P0 @ b1
    W2p, b2p = P1 @ W2 @ P0.T, P1 @ b2
    W3p, b3p = W3 @ P1.T, b3
    h = jax.nn.relu(x @ W1p.T + b1p)
    h = jax.nn.relu(h @ W2p.T + b2p)
    return h @ W3p.T + b3p


if __name__ == "__main__":
    # Small, deterministic shapes: batch=256 (exercises 2 batch tiles of 128),
    # d_in=16, hidden=32, d_out=8.
    batch, d_in, hidden, d_out = 256, 16, 32, 8
    l, tau, n_iter = 1.0, 1.0, 20

    key = jax.random.PRNGKey(0)
    ks = jax.random.split(key, 9)

    # Model parameters (torch.nn.Linear layout: W is (out, in))
    W1 = jax.random.normal(ks[0], (hidden, d_in), jnp.float32) / np.sqrt(d_in)
    b1 = jax.random.normal(ks[1], (hidden,), jnp.float32) * 0.1
    W2 = jax.random.normal(ks[2], (hidden, hidden), jnp.float32) / np.sqrt(hidden)
    b2 = jax.random.normal(ks[3], (hidden,), jnp.float32) * 0.1
    W3 = jax.random.normal(ks[4], (d_out, hidden), jnp.float32) / np.sqrt(hidden)
    b3 = jax.random.normal(ks[5], (d_out,), jnp.float32) * 0.1
    params = (W1, b1, W2, b2, W3, b3)

    # RebasinNet permutation parameters: eye + 0.1 * randn  (P_sizes = (h, h))
    p0 = jnp.eye(hidden, dtype=jnp.float32) + 0.1 * jax.random.normal(
        ks[6], (hidden, hidden), jnp.float32)
    p1 = jnp.eye(hidden, dtype=jnp.float32) + 0.1 * jax.random.normal(
        ks[7], (hidden, hidden), jnp.float32)
    p_list = [p0, p1]

    # Input x (batch, features)
    x = jax.random.normal(ks[8], (batch, d_in), jnp.float32)

    y = rebasin_forward(params, p_list, x, l=l, tau=tau, n_iter=n_iter)
    y = jax.block_until_ready(y)

    y_ref = rebasin_forward_ref(params, p_list, x, l=l, tau=tau, n_iter=n_iter)
    y_ref = jax.block_until_ready(y_ref)

    if not np.allclose(np.asarray(y), np.asarray(y_ref), atol=5e-2, rtol=5e-2):
        raise AssertionError(
            f"mismatch vs reference: max abs err = "
            f"{np.max(np.abs(np.asarray(y) - np.asarray(y_ref)))}")

    print("KERNEL_OK")
</pallas_src>

<mosaic_0001>
module attributes {stable_mosaic.version = 11 : i64} {
  func.func @kernel(%arg0: i32, %arg1: memref<32x32xf32, #tpu.memory_space<vmem>>, %arg2: memref<32x32xf32, #tpu.memory_space<vmem>>, %arg3: memref<32x16xf32, #tpu.memory_space<vmem>>, %arg4: memref<1x32xf32, #tpu.memory_space<vmem>>, %arg5: memref<32x32xf32, #tpu.memory_space<vmem>>, %arg6: memref<1x32xf32, #tpu.memory_space<vmem>>, %arg7: memref<128x32xf32, #tpu.memory_space<vmem>>, %arg8: memref<1x128xf32, #tpu.memory_space<vmem>>, %arg9: memref<128x16xf32, #tpu.memory_space<vmem>>, %arg10: memref<128x128xf32, #tpu.memory_space<vmem>>, %arg11: memref<32x16xbf16, #tpu.memory_space<vmem>>, %arg12: memref<32x32xbf16, #tpu.memory_space<vmem>>, %arg13: memref<128x32xbf16, #tpu.memory_space<vmem>>, %arg14: memref<1x32xf32, #tpu.memory_space<vmem>>, %arg15: memref<1x32xf32, #tpu.memory_space<vmem>>) attributes {dimension_semantics = [#tpu.dimension_semantics<arbitrary>], iteration_bounds = array<i64: 2>, scalar_prefetch = 0 : i64, scratch_operands = 5 : i64, tpu.core_type = #tpu.core_type<tc>, window_params = [{pipeline_mode = #tpu.pipeline_mode<synchronous>, transform_indices = @transform_0, window_bounds = array<i64: 32, 32>}, {pipeline_mode = #tpu.pipeline_mode<synchronous>, transform_indices = @transform_1, window_bounds = array<i64: 32, 32>}, {pipeline_mode = #tpu.pipeline_mode<synchronous>, transform_indices = @transform_2, window_bounds = array<i64: 32, 16>}, {pipeline_mode = #tpu.pipeline_mode<synchronous>, transform_indices = @transform_3, window_bounds = array<i64: 1, 32>}, {pipeline_mode = #tpu.pipeline_mode<synchronous>, transform_indices = @transform_4, window_bounds = array<i64: 32, 32>}, {pipeline_mode = #tpu.pipeline_mode<synchronous>, transform_indices = @transform_5, window_bounds = array<i64: 1, 32>}, {pipeline_mode = #tpu.pipeline_mode<synchronous>, transform_indices = @transform_6, window_bounds = array<i64: 128, 32>}, {pipeline_mode = #tpu.pipeline_mode<synchronous>, transform_indices = @transform_7, window_bounds = array<i64: 1, 128>}, {transform_indices = @transform_8, window_bounds = array<i64: 128, 16>}, {transform_indices = @transform_9, window_bounds = array<i64: 128, 128>}]} {
    %c0_i32 = arith.constant 0 : i32
    %0 = arith.cmpi eq, %arg0, %c0_i32 : i32
    %1 = arith.extui %0 : i1 to i32
    %c0_i32_0 = arith.constant 0 : i32
    %2 = arith.cmpi ne, %1, %c0_i32_0 : i32
    scf.if %2 {
      %c0_20 = arith.constant 0 : index
      %c0_21 = arith.constant 0 : index
      %27 = vector.load %arg1[%c0_20, %c0_21] : memref<32x32xf32, #tpu.memory_space<vmem>>, vector<32x32xf32>
      %cst_22 = arith.constant 1.000000e+00 : f32
      %28 = vector.broadcast %cst_22 : f32 to vector<32x32xf32>
      %29 = arith.mulf %27, %28 : vector<32x32xf32>
      %c0_23 = arith.constant 0 : index
      %c0_24 = arith.constant 0 : index
      %30 = vector.load %arg2[%c0_23, %c0_24] : memref<32x32xf32, #tpu.memory_space<vmem>>, vector<32x32xf32>
      %cst_25 = arith.constant 1.000000e+00 : f32
      %31 = vector.broadcast %cst_25 : f32 to vector<32x32xf32>
      %32 = arith.mulf %30, %31 : vector<32x32xf32>
      %cst_26 = arith.constant dense<0xFF800000> : vector<32xf32>
      %33 = vector.multi_reduction <maximumf>, %29, %cst_26 [0] : vector<32x32xf32> to vector<32xf32>
      %34 = vector.shape_cast %33 : vector<32xf32> to vector<1x32xf32>
      %35 = vector.broadcast %34 : vector<1x32xf32> to vector<32x32xf32>
      %36 = arith.subf %29, %35 : vector<32x32xf32>
      %37 = math.exp %36 : vector<32x32xf32>
      %cst_27 = arith.constant dense<0.000000e+00> : vector<32xf32>
      %38 = vector.multi_reduction <add>, %37, %cst_27 [0] : vector<32x32xf32> to vector<32xf32>
      %39 = vector.shape_cast %38 : vector<32xf32> to vector<1x32xf32>
      %40 = math.log %39 : vector<1x32xf32>
      %41 = arith.addf %40, %34 : vector<1x32xf32>
      %42 = vector.broadcast %41 : vector<1x32xf32> to vector<32x32xf32>
      %43 = arith.subf %29, %42 : vector<32x32xf32>
      %cst_28 = arith.constant dense<0xFF800000> : vector<32xf32>
      %44 = vector.multi_reduction <maximumf>, %32, %cst_28 [0] : vector<32x32xf32> to vector<32xf32>
      %45 = vector.shape_cast %44 : vector<32xf32> to vector<1x32xf32>
      %46 = vector.broadcast %45 : vector<1x32xf32> to vector<32x32xf32>
      %47 = arith.subf %32, %46 : vector<32x32xf32>
      %48 = math.exp %47 : vector<32x32xf32>
      %cst_29 = arith.constant dense<0.000000e+00> : vector<32xf32>
      %49 = vector.multi_reduction <add>, %48, %cst_29 [0] : vector<32x32xf32> to vector<32xf32>
      %50 = vector.shape_cast %49 : vector<32xf32> to vector<1x32xf32>
      %51 = math.log %50 : vector<1x32xf32>
      %52 = arith.addf %51, %45 : vector<1x32xf32>
      %53 = vector.broadcast %52 : vector<1x32xf32> to vector<32x32xf32>
      %54 = arith.subf %32, %53 : vector<32x32xf32>
      %55 = math.exp %43 : vector<32x32xf32>
      %cst_30 = arith.constant dense<0.000000e+00> : vector<32xf32>
      %56 = vector.multi_reduction <add>, %55, %cst_30 [1] : vector<32x32xf32> to vector<32xf32>
      %57 = vector.shape_cast %56 : vector<32xf32> to vector<32x1xf32>
      %58 = math.log %57 : vector<32x1xf32>
      %59 = vector.broadcast %58 : vector<32x1xf32> to vector<32x32xf32>
      %60 = arith.subf %43, %59 : vector<32x32xf32>
      %61 = math.exp %54 : vector<32x32xf32>
      %cst_31 = arith.constant dense<0.000000e+00> : vector<32xf32>
      %62 = vector.multi_reduction <add>, %61, %cst_31 [1] : vector<32x32xf32> to vector<32xf32>
      %63 = vector.shape_cast %62 : vector<32xf32> to vector<32x1xf32>
      %64 = math.log %63 : vector<32x1xf32>
      %65 = vector.broadcast %64 : vector<32x1xf32> to vector<32x32xf32>
      %66 = arith.subf %54, %65 : vector<32x32xf32>
      %c0_i32_32 = arith.constant 0 : i32
      %c19_i32 = arith.constant 19 : i32
      %67 = arith.addi %c0_i32_32, %c19_i32 : i32
      %c1_i32 = arith.constant 1 : i32
      %68:2 = scf.for %arg16 = %c0_i32_32 to %67 step %c1_i32 iter_args(%arg17 = %60, %arg18 = %66) -> (vector<32x32xf32>, vector<32x32xf32>)  : i32 {
        %96 = math.exp %arg17 : vector<32x32xf32>
        %cst_59 = arith.constant dense<0.000000e+00> : vector<32xf32>
        %97 = vector.multi_reduction <add>, %96, %cst_59 [0] : vector<32x32xf32> to vector<32xf32>
        %98 = vector.shape_cast %97 : vector<32xf32> to vector<1x32xf32>
        %99 = math.log %98 : vector<1x32xf32>
        %100 = vector.broadcast %99 : vector<1x32xf32> to vector<32x32xf32>
        %101 = arith.subf %arg17, %100 : vector<32x32xf32>
        %102 = math.exp %arg18 : vector<32x32xf32>
        %cst_60 = arith.constant dense<0.000000e+00> : vector<32xf32>
        %103 = vector.multi_reduction <add>, %102, %cst_60 [0] : vector<32x32xf32> to vector<32xf32>
        %104 = vector.shape_cast %103 : vector<32xf32> to vector<1x32xf32>
        %105 = math.log %104 : vector<1x32xf32>
        %106 = vector.broadcast %105 : vector<1x32xf32> to vector<32x32xf32>
        %107 = arith.subf %arg18, %106 : vector<32x32xf32>
        %108 = math.exp %101 : vector<32x32xf32>
        %cst_61 = arith.constant dense<0.000000e+00> : vector<32xf32>
        %109 = vector.multi_reduction <add>, %108, %cst_61 [1] : vector<32x32xf32> to vector<32xf32>
        %110 = vector.shape_cast %109 : vector<32xf32> to vector<32x1xf32>
        %111 = math.log %110 : vector<32x1xf32>
        %112 = vector.broadcast %111 : vector<32x1xf32> to vector<32x32xf32>
        %113 = arith.subf %101, %112 : vector<32x32xf32>
        %114 = math.exp %107 : vector<32x32xf32>
        %cst_62 = arith.constant dense<0.000000e+00> : vector<32xf32>
        %115 = vector.multi_reduction <add>, %114, %cst_62 [1] : vector<32x32xf32> to vector<32xf32>
        %116 = vector.shape_cast %115 : vector<32xf32> to vector<32x1xf32>
        %117 = math.log %116 : vector<32x1xf32>
        %118 = vector.broadcast %117 : vector<32x1xf32> to vector<32x32xf32>
        %119 = arith.subf %107, %118 : vector<32x32xf32>
        scf.yield %113, %119 : vector<32x32xf32>, vector<32x32xf32>
      }
      %69 = math.exp %68#0 : vector<32x32xf32>
      %70 = math.exp %68#1 : vector<32x32xf32>
      %71 = arith.truncf %69 : vector<32x32xf32> to vector<32x32xbf16>
      %72 = arith.truncf %70 : vector<32x32xf32> to vector<32x32xbf16>
      %c0_33 = arith.constant 0 : index
      %c0_34 = arith.constant 0 : index
      %73 = vector.load %arg3[%c0_33, %c0_34] : memref<32x16xf32, #tpu.memory_space<vmem>>, vector<32x16xf32>
      %74 = arith.truncf %73 : vector<32x16xf32> to vector<32x16xbf16>
      %c0_35 = arith.constant 0 : index
      %c0_36 = arith.constant 0 : index
      %75 = vector.load %arg5[%c0_35, %c0_36] : memref<32x32xf32, #tpu.memory_space<vmem>>, vector<32x32xf32>
      %76 = arith.truncf %75 : vector<32x32xf32> to vector<32x32xbf16>
      %c0_37 = arith.constant 0 : index
      %c0_38 = arith.constant 0 : index
      %77 = vector.load %arg7[%c0_37, %c0_38] : memref<128x32xf32, #tpu.memory_space<vmem>>, vector<128x32xf32>
      %78 = arith.truncf %77 : vector<128x32xf32> to vector<128x32xbf16>
      %cst_39 = arith.constant dense<0.000000e+00> : vector<32x16xf32>
      %79 = tpu.matmul %71, %74, %cst_39 {dimension_numbers = #tpu.dot_dimension_numbers<[1], [0], [0], [1], [0, 0, 1, 1], [], []>} : vector<32x32xbf16>, vector<32x16xbf16>, vector<32x16xf32> -> vector<32x16xf32>
      %80 = arith.truncf %79 : vector<32x16xf32> to vector<32x16xbf16>
      %c0_40 = arith.constant 0 : index
      %c0_41 = arith.constant 0 : index
      %81 = vector.load %arg11[%c0_40, %c0_41] : memref<32x16xbf16, #tpu.memory_space<vmem>>, vector<32x16xbf16>
      tpu.vector_store %arg11[%c0_40, %c0_41], %80 {strides = array<i32>} : memref<32x16xbf16, #tpu.memory_space<vmem>>, vector<32x16xbf16>,
      %cst_42 = arith.constant dense<0.000000e+00> : vector<32x32xf32>
      %82 = tpu.matmul %72, %76, %cst_42 {dimension_numbers = #tpu.dot_dimension_numbers<[1], [0], [0], [1], [0, 0, 1, 1], [], []>} : vector<32x32xbf16>, vector<32x32xbf16>, vector<32x32xf32> -> vector<32x32xf32>
      %83 = arith.truncf %82 : vector<32x32xf32> to vector<32x32xbf16>
      %cst_43 = arith.constant dense<0.000000e+00> : vector<32x32xf32>
      %84 = tpu.matmul %83, %71, %cst_43 {dimension_numbers = #tpu.dot_dimension_numbers<[1], [1], [0], [0], [0, 0, 1, 0], [], []>} : vector<32x32xbf16>, vector<32x32xbf16>, vector<32x32xf32> -> vector<32x32xf32>
      %85 = arith.truncf %84 : vector<32x32xf32> to vector<32x32xbf16>
      %c0_44 = arith.constant 0 : index
      %c0_45 = arith.constant 0 : index
      %86 = vector.load %arg12[%c0_44, %c0_45] : memref<32x32xbf16, #tpu.memory_space<vmem>>, vector<32x32xbf16>
      tpu.vector_store %arg12[%c0_44, %c0_45], %85 {strides = array<i32>} : memref<32x32xbf16, #tpu.memory_space<vmem>>, vector<32x32xbf16>,
      %cst_46 = arith.constant dense<0.000000e+00> : vector<128x32xf32>
      %87 = tpu.matmul %78, %72, %cst_46 {dimension_numbers = #tpu.dot_dimension_numbers<[1], [1], [0], [0], [0, 0, 1, 0], [], []>} : vector<128x32xbf16>, vector<32x32xbf16>, vector<128x32xf32> -> vector<128x32xf32>
      %88 = arith.truncf %87 : vector<128x32xf32> to vector<128x32xbf16>
      %c0_47 = arith.constant 0 : index
      %c0_48 = arith.constant 0 : index
      %89 = vector.load %arg13[%c0_47, %c0_48] : memref<128x32xbf16, #tpu.memory_space<vmem>>, vector<128x32xbf16>
      tpu.vector_store %arg13[%c0_47, %c0_48], %88 {strides = array<i32>} : memref<128x32xbf16, #tpu.memory_space<vmem>>, vector<128x32xbf16>,
      %c0_49 = arith.constant 0 : index
      %c0_50 = arith.constant 0 : index
      %90 = vector.load %arg4[%c0_49, %c0_50] : memref<1x32xf32, #tpu.memory_space<vmem>>, vector<1x32xf32>
      %cst_51 = arith.constant dense<0.000000e+00> : vector<1x32xf32>
      %91 = tpu.matmul %90, %69, %cst_51 {dimension_numbers = #tpu.dot_dimension_numbers<[1], [1], [0], [0], [0, 0, 1, 0], [], []>} : vector<1x32xf32>, vector<32x32xf32>, vector<1x32xf32> -> vector<1x32xf32>
      %c0_52 = arith.constant 0 : index
      %c0_53 = arith.constant 0 : index
      %92 = vector.load %arg14[%c0_52, %c0_53] : memref<1x32xf32, #tpu.memory_space<vmem>>, vector<1x32xf32>
      tpu.vector_store %arg14[%c0_52, %c0_53], %91 {strides = array<i32>} : memref<1x32xf32, #tpu.memory_space<vmem>>, vector<1x32xf32>,
      %c0_54 = arith.constant 0 : index
      %c0_55 = arith.constant 0 : index
      %93 = vector.load %arg6[%c0_54, %c0_55] : memref<1x32xf32, #tpu.memory_space<vmem>>, vector<1x32xf32>
      %cst_56 = arith.constant dense<0.000000e+00> : vector<1x32xf32>
      %94 = tpu.matmul %93, %70, %cst_56 {dimension_numbers = #tpu.dot_dimension_numbers<[1], [1], [0], [0], [0, 0, 1, 0], [], []>} : vector<1x32xf32>, vector<32x32xf32>, vector<1x32xf32> -> vector<1x32xf32>
      %c0_57 = arith.constant 0 : index
      %c0_58 = arith.constant 0 : index
      %95 = vector.load %arg15[%c0_57, %c0_58] : memref<1x32xf32, #tpu.memory_space<vmem>>, vector<1x32xf32>
      tpu.vector_store %arg15[%c0_57, %c0_58], %94 {strides = array<i32>} : memref<1x32xf32, #tpu.memory_space<vmem>>, vector<1x32xf32>,
    } else {
    }
    %c0 = arith.constant 0 : index
    %c0_1 = arith.constant 0 : index
    %3 = vector.load %arg9[%c0, %c0_1] : memref<128x16xf32, #tpu.memory_space<vmem>>, vector<128x16xf32>
    %4 = arith.truncf %3 : vector<128x16xf32> to vector<128x16xbf16>
    %c0_2 = arith.constant 0 : index
    %c0_3 = arith.constant 0 : index
    %5 = vector.load %arg11[%c0_2, %c0_3] : memref<32x16xbf16, #tpu.memory_space<vmem>>, vector<32x16xbf16>
    %cst = arith.constant dense<0.000000e+00> : vector<128x32xf32>
    %6 = tpu.matmul %4, %5, %cst {dimension_numbers = #tpu.dot_dimension_numbers<[1], [1], [0], [0], [0, 0, 1, 0], [], []>} : vector<128x16xbf16>, vector<32x16xbf16>, vector<128x32xf32> -> vector<128x32xf32>
    %c0_4 = arith.constant 0 : index
    %c0_5 = arith.constant 0 : index
    %7 = vector.load %arg14[%c0_4, %c0_5] : memref<1x32xf32, #tpu.memory_space<vmem>>, vector<1x32xf32>
    %8 = vector.broadcast %7 : vector<1x32xf32> to vector<128x32xf32>
    %9 = arith.addf %6, %8 : vector<128x32xf32>
    %cst_6 = arith.constant 0.000000e+00 : f32
    %10 = vector.broadcast %cst_6 : f32 to vector<128x32xf32>
    %11 = arith.maximumf %9, %10 : vector<128x32xf32>
    %12 = arith.truncf %11 : vector<128x32xf32> to vector<128x32xbf16>
    %c0_7 = arith.constant 0 : index
    %c0_8 = arith.constant 0 : index
    %13 = vector.load %arg12[%c0_7, %c0_8] : memref<32x32xbf16, #tpu.memory_space<vmem>>, vector<32x32xbf16>
    %cst_9 = arith.constant dense<0.000000e+00> : vector<128x32xf32>
    %14 = tpu.matmul %12, %13, %cst_9 {dimension_numbers = #tpu.dot_dimension_numbers<[1], [1], [0], [0], [0, 0, 1, 0], [], []>} : vector<128x32xbf16>, vector<32x32xbf16>, vector<128x32xf32> -> vector<128x32xf32>
    %c0_10 = arith.constant 0 : index
    %c0_11 = arith.constant 0 : index
    %15 = vector.load %arg15[%c0_10, %c0_11] : memref<1x32xf32, #tpu.memory_space<vmem>>, vector<1x32xf32>
    %16 = vector.broadcast %15 : vector<1x32xf32> to vector<128x32xf32>
    %17 = arith.addf %14, %16 : vector<128x32xf32>
    %cst_12 = arith.constant 0.000000e+00 : f32
    %18 = vector.broadcast %cst_12 : f32 to vector<128x32xf32>
    %19 = arith.maximumf %17, %18 : vector<128x32xf32>
    %20 = arith.truncf %19 : vector<128x32xf32> to vector<128x32xbf16>
    %c0_13 = arith.constant 0 : index
    %c0_14 = arith.constant 0 : index
    %21 = vector.load %arg13[%c0_13, %c0_14] : memref<128x32xbf16, #tpu.memory_space<vmem>>, vector<128x32xbf16>
    %cst_15 = arith.constant dense<0.000000e+00> : vector<128x128xf32>
    %22 = tpu.matmul %20, %21, %cst_15 {dimension_numbers = #tpu.dot_dimension_numbers<[1], [1], [0], [0], [0, 0, 1, 0], [], []>} : vector<128x32xbf16>, vector<128x32xbf16>, vector<128x128xf32> -> vector<128x128xf32>
    %c0_16 = arith.constant 0 : index
    %c0_17 = arith.constant 0 : index
    %23 = vector.load %arg8[%c0_16, %c0_17] : memref<1x128xf32, #tpu.memory_space<vmem>>, vector<1x128xf32>
    %24 = vector.broadcast %23 : vector<1x128xf32> to vector<128x128xf32>
    %25 = arith.addf %22, %24 : vector<128x128xf32>
    %c0_18 = arith.constant 0 : index
    %c0_19 = arith.constant 0 : index
    %26 = vector.load %arg10[%c0_18, %c0_19] : memref<128x128xf32, #tpu.memory_space<vmem>>, vector<128x128xf32>
    tpu.vector_store %arg10[%c0_18, %c0_19], %25 {strides = array<i32>} : memref<128x128xf32, #tpu.memory_space<vmem>>, vector<128x128xf32>,
    return
  }
  func.func @transform_0(%arg0: i32) -> (i32, i32) {
    %c0_i32 = arith.constant 0 : i32
    %c0_i32_0 = arith.constant 0 : i32
    %c0_i32_1 = arith.constant 0 : i32
    return %c0_i32, %c0_i32_0 : i32, i32
  }
  func.func @transform_1(%arg0: i32) -> (i32, i32) {
    %c0_i32 = arith.constant 0 : i32
    %c0_i32_0 = arith.constant 0 : i32
    %c0_i32_1 = arith.constant 0 : i32
    return %c0_i32, %c0_i32_0 : i32, i32
  }
  func.func @transform_2(%arg0: i32) -> (i32, i32) {
    %c0_i32 = arith.constant 0 : i32
    %c0_i32_0 = arith.constant 0 : i32
    %c0_i32_1 = arith.constant 0 : i32
    return %c0_i32, %c0_i32_0 : i32, i32
  }
  func.func @transform_3(%arg0: i32) -> (i32, i32) {
    %c0_i32 = arith.constant 0 : i32
    %c0_i32_0 = arith.constant 0 : i32
    %c0_i32_1 = arith.constant 0 : i32
    return %c0_i32, %c0_i32_0 : i32, i32
  }
  func.func @transform_4(%arg0: i32) -> (i32, i32) {
    %c0_i32 = arith.constant 0 : i32
    %c0_i32_0 = arith.constant 0 : i32
    %c0_i32_1 = arith.constant 0 : i32
    return %c0_i32, %c0_i32_0 : i32, i32
  }
  func.func @transform_5(%arg0: i32) -> (i32, i32) {
    %c0_i32 = arith.constant 0 : i32
    %c0_i32_0 = arith.constant 0 : i32
    %c0_i32_1 = arith.constant 0 : i32
    return %c0_i32, %c0_i32_0 : i32, i32
  }
  func.func @transform_6(%arg0: i32) -> (i32, i32) {
    %c0_i32 = arith.constant 0 : i32
    %c0_i32_0 = arith.constant 0 : i32
    %c0_i32_1 = arith.constant 0 : i32
    return %c0_i32, %c0_i32_0 : i32, i32
  }
  func.func @transform_7(%arg0: i32) -> (i32, i32) {
    %c0_i32 = arith.constant 0 : i32
    %c0_i32_0 = arith.constant 0 : i32
    %c0_i32_1 = arith.constant 0 : i32
    return %c0_i32, %c0_i32_0 : i32, i32
  }
  func.func @transform_8(%arg0: i32) -> (i32, i32) {
    %c0_i32 = arith.constant 0 : i32
    %c0_i32_0 = arith.constant 0 : i32
    return %arg0, %c0_i32 : i32, i32
  }
  func.func @transform_9(%arg0: i32) -> (i32, i32) {
    %c0_i32 = arith.constant 0 : i32
    %c0_i32_0 = arith.constant 0 : i32
    return %arg0, %c0_i32 : i32, i32
  }
}

</mosaic_0001>

<bundles_post_ra>
// kernel: tpu_custom_call.1
= control target key start
LH: loop header
LB: loop body
LE: loop exit
PB: predicated region body
PF: predicated region fallthrough
CT: control target
= control target key end

     0   :  { %14 = vsyncpa [#allocation8], 0  ;;  %s3373_s0 = inlined_call_operand.vmem [shape: f32[32,32], index: 0, kind: input, shape index: {}]   ;;  %s3374_s1 = inlined_call_operand.vmem [shape: f32[32,32], index: 1, kind: input, shape index: {}]   ;;  %s3375_s2 = inlined_call_operand.vmem [shape: f32[32,16], index: 2, kind: input, shape index: {}]   ;;  %s3376_s3 = inlined_call_operand.vmem [shape: f32[1,32], index: 3, kind: input, shape index: {}]   ;;  %s3377_s4 = inlined_call_operand.vmem [shape: f32[32,32], index: 4, kind: input, shape index: {}]   ;;  %s3378_s5 = inlined_call_operand.vmem [shape: f32[1,32], index: 5, kind: input, shape index: {}]   ;;  %s3379_s6 = inlined_call_operand.vmem [shape: f32[128,32], index: 6, kind: input, shape index: {}]   ;;  %s3380_s7 = inlined_call_operand.vmem [shape: f32[1,128], index: 7, kind: input, shape index: {}]   ;;  %s3381_s8 = inlined_call_operand.vmem [shape: f32[256,16], index: 8, kind: input, shape index: {}]   ;;  %s3382_s9 = inlined_call_operand.hbm [shape: f32[256,128], index: 9, kind: output, shape index: {}]  }
   0x1   :  { %16 = vsyncpa [#allocation8 + $0x1], 0  ;;  %s2757_s30 = smov 0   ;;  %s2759_s10 = smov 0  }
   0x2   :  { %s2761_s11 = smov 0   ;;  %s2763_s12 = smov 0  }
   0x3 LB: > { %s2778_s13 = sadd.s32 4294967295, %s2664_s12   ;;  %s1974_s14 = sadd.s32 4294967294, %s2664_s12   ;;  %s2664_s12 = sphi %s2763_s12, %s3398_s12   ;;  %s2660_s11 = sphi %s2761_s11, %s3397_s11   ;;  %s2656_s10 = sphi %s2759_s10, %s3396_s10   ;;  %s2652_s30 = sphi %s2757_s30, %s3395_s30  }
   0x4   : > { %s2782_s15 = sadd.s32 1, %s2664_s12   ;;  %s223_s16 = sadd.s32 1, %s2660_s11 }
   0x5   : > { %s220_s17 = ssub.s32 %s2664_s12, %s2782_s15  ;;  %p233_p0 = scmp.ne.s32.totalorder %s2660_s11, %s2656_s10 }
   0x6   : > { %p221_p1 = scmp.eq.s32.totalorder %s220_s17, 0  ;;  %p234_p2 = scmp.eq.s32.totalorder %s2778_s13, 1 }
   0x7   : > { %p239_p3 = scmp.ne.s32.totalorder %s2656_s10, %s2652_s30  ;;  %p240_p4 = scmp.eq.s32.totalorder %s1974_s14, 1 }
   0x8   : > { %s2793_s18 = scalar_select %p221_p1, %s2660_s11, %s223_s16  }
   0x9   : > { %p2795_p5 = por %p234_p2, %p233_p0  ;;  %p2799_p6 = por %p240_p4, %p239_p3 }
   0xa   : > { %p1977_p7 = scmp.ge.s32.totalorder %s2664_s12, 1  ;;  %p291_p8 = scmp.lt.s32.totalorder %s2664_s12, 3 }
   0xc   : > { %p292_p9 = pnand %p1977_p7, %p291_p8 }
   0xd   : > { %s3383_s21 = sand.u32 (!%p292_p9), 1, %s2656_s10   ;;  %s1979_s22 = sshll.u32 (!%p292_p9), %s2778_s13, 4 }
   0xe   : > { %295 = sbr.rel (%p292_p9) target bundleno = 1642 (0x66a), region = 56  ;;  %s1978_s23 = sshll.u32 (!%p292_p9), %s3383_s21, 7 }
   0xf   : > { %p328_p10 = scmp.lt.s32.totalorder (!%p292_p9), %s1979_s22, 31  ;;  %s2814_s28 = scalar_lea.vmem (!%p292_p9), [#allocation7], %s1978_s23 }
  0x10   : > { %p1981_p11 = scmp.ne.s32.totalorder (!%p292_p9), %s2778_s13, 0 }
  0x13   : > { %s3400_s22 = smov (!%p328_p10, %s1979_s22), 31  ;;  %338 = sbr.rel (%p1981_p11) target bundleno = 974 (0x3ce), region = 60 }
  0x14   : > { %s1980_s24 = sshll.u32 %s3400_s22, 3  ;;  %s2967_s23 = smov (!%p1981_p11), 0  }
  0x15   : > { %s2812_s27 = scalar_lea.vmem %s3381_s8, %s1980_s24 }
  0x18   : > { %v2820_v0 = vld [vmem:[%s3373_s0] sm:$0xff]  ;;  %v2825_v1 = vld [vmem:[%s3373_s0 + $0x8] sm:$0xff]  ;;  %v2830_v2 = vld [vmem:[%s3373_s0 + $0x10] sm:$0xff]  ;;  %vm347_vm0 = vcmask 261120  }
  0x19   : > { %v2835_v3 = vld [vmem:[%s3373_s0 + $0x18] sm:$0xff]  ;;  %v348_v4 = vsel %vm347_vm0, %v2820_v0, -inf  ;;  %v349_v5 = vsel %vm347_vm0, %v2825_v1, -inf  ;;  %v350_v6 = vsel %vm347_vm0, %v2830_v2, -inf  ;;  %v2846_v7 = vld [vmem:[%s3374_s1] sm:$0xff]  ;;  %v2851_v8 = vld [vmem:[%s3374_s1 + $0x8] sm:$0xff] }
  0x1a   : > { %v351_v9 = vsel %vm347_vm0, %v2835_v3, -inf  ;;  %v352_v10 = vmax.f32 %v348_v4, %v349_v5  ;;  %v2858_v11 = vld [vmem:[%s3374_s1 + $0x10] sm:$0xff]  ;;  %v2863_v12 = vld [vmem:[%s3374_s1 + $0x18] sm:$0xff]  ;;  %v393_v13 = vsel %vm347_vm0, %v2846_v7, -inf  ;;  %v394_v14 = vsel %vm347_vm0, %v2851_v8, -inf }
  0x1b   : > { %v353_v15 = vmax.f32 %v350_v6, %v351_v9  ;;  %v395_v16 = vsel %vm347_vm0, %v2858_v11, -inf  ;;  %v396_v17 = vsel %vm347_vm0, %v2863_v12, -inf  ;;  %v397_v18 = vmax.f32 %v393_v13, %v394_v14 }
  0x1c   : > { %v398_v19 = vmax.f32 %v395_v16, %v396_v17 }
  0x1d   : > { %v354_v20 = vmax.f32 %v352_v10, %v353_v15 }
  0x1e   : > { %v399_v21 = vmax.f32 %v397_v18, %v398_v19 }
  0x1f   : > { %v355_v22 = vrot.slane %v354_v20, 4 }
  0x20   : > { %v400_v23 = vrot.slane %v399_v21, 4 }
  0x21   : > { %v356_v24 = vmax.f32 %v354_v20, %v355_v22 }
  0x22   : > { %v401_v25 = vmax.f32 %v399_v21, %v400_v23 }
  0x23   : > { %v357_v26 = vrot.slane %v356_v24, 2 }
  0x24   : > { %v402_v27 = vrot.slane %v401_v25, 2 }
  0x25   : > { %v358_v28 = vmax.f32 %v356_v24, %v357_v26 }
  0x26   : > { %v403_v29 = vmax.f32 %v401_v25, %v402_v27 }
  0x27   : > { %v359_v30 = vrot.slane %v358_v28, 1 }
  0x28   : > { %v404_v31 = vrot.slane %v403_v29, 1 }
  0x29   : > { %v2873_v32 = vmax.f32 %v358_v28, %v359_v30 }
  0x2a   : > { %v2875_v33 = vmax.f32 %v403_v29, %v404_v31 }
  0x2b   : > { %v361_v34 = vsub.f32 %v2820_v0, %v2873_v32  ;;  %v362_v35 = vsub.f32 %v2825_v1, %v2873_v32  ;;  %v363_v36 = vsub.f32 %v2830_v2, %v2873_v32  ;;  %v364_v37 = vsub.f32 %v2835_v3, %v2873_v32 }
  0x2c   : > { %v406_v38 = vsub.f32 %v2846_v7, %v2875_v33  ;;  %v407_v39 = vsub.f32 %v2851_v8, %v2875_v33  ;;  %v408_v43 = vsub.f32 %v2858_v11, %v2875_v33  ;;  %v409_v45 = vsub.f32 %v2863_v12, %v2875_v33 }
  0x2d   : > { %v365_v40 = vmul.f32 1.442695, %v361_v34  ;;  %v367_v41 = vmul.f32 1.442695, %v362_v35  ;;  %v369_v42 = vmul.f32 1.442695, %v363_v36 }
  0x2e   : > { %v371_v44 = vmul.f32 1.442695, %v364_v37  ;;  %v410_v46 = vmul.f32 1.442695, %v406_v38  ;;  %v412_v47 = vmul.f32 1.442695, %v407_v39 }
  0x2f   : > { %2436 = vpow2.f32 %v365_v40  ;;  %v414_v48 = vmul.f32 1.442695, %v408_v43  ;;  %v416_v49 = vmul.f32 1.442695, %v409_v45 }
  0x30   : > { %2438 = vpow2.f32 %v367_v41 }
  0x31   : > { %2440 = vpow2.f32 %v369_v42 }
  0x32   : > { %2442 = vpow2.f32 %v371_v44 }
  0x33   : > { %2444 = vpow2.f32 %v410_v46 }
  0x34   : > { %2446 = vpow2.f32 %v412_v47 }
  0x35   : > { %2448 = vpow2.f32 %v414_v48 }
  0x36   : > { %2450 = vpow2.f32 %v416_v49 }
  0x3c   : > { %v2437_v50 = vpop.eup %2436 }
  0x3d   : > { %v2439_v51 = vpop.eup %2438  ;;  %v373_v52 = vsel %vm347_vm0, %v2437_v50, 0.0 }
  0x3e   : > { %v2441_v53 = vpop.eup %2440  ;;  %v374_v54 = vsel %vm347_vm0, %v2439_v51, 0.0 }
  0x3f   : > { %v2443_v55 = vpop.eup %2442  ;;  %v375_v56 = vadd.f32 %v374_v54, %v373_v52  ;;  %v376_v57 = vsel %vm347_vm0, %v2441_v53, 0.0 }
  0x40   : > { %v2445_v58 = vpop.eup %2444  ;;  %v378_v59 = vsel %vm347_vm0, %v2443_v55, 0.0 }
  0x41   : > { %v2447_v60 = vpop.eup %2446  ;;  %v377_v61 = vadd.f32 %v376_v57, %v375_v56  ;;  %v418_v62 = vsel %vm347_vm0, %v2445_v58, 0.0 }
  0x42   : > { %v2449_v63 = vpop.eup %2448  ;;  %v419_v4 = vsel %vm347_vm0, %v2447_v60, 0.0 }
  0x43   : > { %v2451_v5 = vpop.eup %2450  ;;  %v379_v6 = vadd.f32 %v378_v59, %v377_v61  ;;  %v420_v9 = vadd.f32 %v419_v4, %v418_v62  ;;  %v421_v10 = vsel %vm347_vm0, %v2449_v63, 0.0 }
  0x44   : > { %v423_v13 = vsel %vm347_vm0, %v2451_v5, 0.0 }
  0x45   : > { %v380_v14 = vrot.slane %v379_v6, 4  ;;  %v422_v15 = vadd.f32 %v421_v10, %v420_v9 }
  0x47   : > { %v381_v16 = vadd.f32 %v380_v14, %v379_v6  ;;  %v424_v17 = vadd.f32 %v423_v13, %v422_v15 }
  0x49   : > { %v382_v18 = vrot.slane %v381_v16, 2  ;;  %v425_v19 = vrot.slane %v424_v17, 4 }
  0x4b   : > { %v383_v20 = vadd.f32 %v382_v18, %v381_v16  ;;  %v426_v21 = vadd.f32 %v425_v19, %v424_v17 }
  0x4d   : > { %v384_v22 = vrot.slane %v383_v20, 1  ;;  %v427_v23 = vrot.slane %v426_v21, 2 }
  0x4f   : > { %v385_v24 = vadd.f32 %v384_v22, %v383_v20  ;;  %v428_v25 = vadd.f32 %v427_v23, %v426_v21 }
  0x51   : > { %2452 = vlog2.f32 %v385_v24  ;;  %v429_v26 = vrot.slane %v428_v25, 1 }
  0x53   : > { %v430_v27 = vadd.f32 %v429_v26, %v428_v25 }
  0x55   : > { %2454 = vlog2.f32 %v430_v27 }
  0x5e   : > { %v2453_v28 = vpop.eup %2452 }
  0x5f   : > { %v387_v29 = vmul.f32 0.6931472, %v2453_v28 }
  0x61   : > { %v388_v30 = vadd.f32 %v387_v29, %v2873_v32 }
  0x62   : > { %v2455_v31 = vpop.eup %2454 }
  0x63   : > { %v2903_v34 = vsub.f32 %v2830_v2, %v388_v30  ;;  %v2906_v35 = vsub.f32 %v2820_v0, %v388_v30  ;;  %v2909_v36 = vsub.f32 %v2835_v3, %v388_v30  ;;  %v2912_v37 = vsub.f32 %v2825_v1, %v388_v30 }
  0x64   : > { %v432_v38 = vmul.f32 0.6931472, %v2455_v31 }
  0x65   : > { %v442_v39 = vmul.f32 1.442695, %v2903_v34  ;;  %v438_v40 = vmul.f32 1.442695, %v2906_v35  ;;  %v444_v32 = vmul.f32 1.442695, %v2909_v36 }
  0x66   : > { %v440_v41 = vmul.f32 1.442695, %v2912_v37  ;;  %v433_v2 = vadd.f32 %v432_v38, %v2875_v33 }
  0x67   : > { %2456 = vpow2.f32 %v442_v39 }
  0x68   : > { %2458 = vpow2.f32 %v438_v40  ;;  %v2920_v0 = vsub.f32 %v2851_v8, %v433_v2  ;;  %v2923_v3 = vsub.f32 %v2846_v7, %v433_v2  ;;  %v2926_v1 = vsub.f32 %v2863_v12, %v433_v2 }
  0x69   : > { %2460 = vpow2.f32 %v444_v32  ;;  %v2929_v42 = vsub.f32 %v2858_v11, %v433_v2 }
  0x6a   : > { %2462 = vpow2.f32 %v440_v41  ;;  %v472_v43 = vmul.f32 1.442695, %v2920_v0  ;;  %v470_v33 = vmul.f32 1.442695, %v2923_v3  ;;  %v476_v44 = vmul.f32 1.442695, %v2926_v1 }
  0x6b   : > { %v474_v8 = vmul.f32 1.442695, %v2929_v42 }
  0x6c   : > { %2464 = vpow2.f32 %v472_v43 }
  0x6d   : > { %2466 = vpow2.f32 %v470_v33 }
  0x6e   : > { %2468 = vpow2.f32 %v476_v44 }
  0x6f   : > { %2470 = vpow2.f32 %v474_v8 }
  0x74   : > { %v2457_v7 = vpop.eup %2456 }
  0x75   : > { %v2459_v12 = vpop.eup %2458  ;;  %v452_v45 = vsel %vm347_vm0, %v2457_v7, 0.0 }
  0x76   : > { %v2461_v46 = vpop.eup %2460  ;;  %453 = vadd.xlane.f32.xlu1 %v452_v45  ;;  %v446_v11 = vsel %vm347_vm0, %v2459_v12, 0.0 }
  0x77   : > { %v2463_v47 = vpop.eup %2462  ;;  %447 = vadd.xlane.f32.xlu0 %v446_v11  ;;  %v455_v48 = vsel %vm347_vm0, %v2461_v46, 0.0 }
  0x78   : > { %v449_v49 = vsel %vm347_vm0, %v2463_v47, 0.0 }
  0x79   : > { %v2465_v50 = vpop.eup %2464 }
  0x7a   : > { %v2467_v51 = vpop.eup %2466  ;;  %456 = vadd.xlane.f32.xlu1 %v455_v48  ;;  %v481_v52 = vsel %vm347_vm0, %v2465_v50, 0.0 }
  0x7b   : > { %450 = vadd.xlane.f32.xlu0 %v449_v49  ;;  %v2469_v53 = vpop.eup %2468  ;;  %v478_v54 = vsel %vm347_vm0, %v2467_v51, 0.0 }
  0x7c   : > { %v2471_v55 = vpop.eup %2470  ;;  %v487_v56 = vsel %vm347_vm0, %v2469_v53, 0.0 }
  0x7d   : > { %v484_v57 = vsel %vm347_vm0, %v2471_v55, 0.0 }
  0x7e   : > { %482 = vadd.xlane.f32.xlu1 %v481_v52 }
  0x7f   : > { %479 = vadd.xlane.f32.xlu0 %v478_v54 }
  0x82   : > { %488 = vadd.xlane.f32.xlu1 %v487_v56 }
  0x83   : > { %485 = vadd.xlane.f32.xlu0 %v484_v57 }
  0xff   : > { %v454_v58 = vpop.xlane.xlu1 %453 }
 0x100   : > { %2472 = vlog2.f32 %v454_v58  ;;  %v448_v59 = vpop.xlane.xlu0 %447 }
 0x101   : > { %2474 = vlog2.f32 %v448_v59 }
 0x103   : > { %v457_v60 = vpop.xlane.xlu1 %456 }
 0x104   : > { %2476 = vlog2.f32 %v457_v60  ;;  %v451_v61 = vpop.xlane.xlu0 %450 }
 0x105   : > { %2478 = vlog2.f32 %v451_v61 }
 0x107   : > { %v483_v62 = vpop.xlane.xlu1 %482 }
 0x108   : > { %2480 = vlog2.f32 %v483_v62  ;;  %v480_v63 = vpop.xlane.xlu0 %479 }
 0x109   : > { %2482 = vlog2.f32 %v480_v63 }
 0x10b   : > { %v489_v4 = vpop.xlane.xlu1 %488 }
 0x10c   : > { %2484 = vlog2.f32 %v489_v4  ;;  %v486_v5 = vpop.xlane.xlu0 %485 }
 0x10d   : > { %v2473_v6 = vpop.eup %2472  ;;  %2486 = vlog2.f32 %v486_v5 }
 0x10e   : > { %v2475_v9 = vpop.eup %2474  ;;  %v463_v10 = vmul.f32 0.6931472, %v2473_v6 }
 0x10f   : > { %v459_v13 = vmul.f32 0.6931472, %v2475_v9 }
 0x110   : > { %v468_v14 = vsub.f32 %v2903_v34, %v463_v10  }
 0x111   : > { %v2477_v15 = vpop.eup %2476  ;;  %v466_v16 = vsub.f32 %v2906_v35, %v459_v13  }
 0x112   : > { %v2479_v17 = vpop.eup %2478  ;;  %v465_v18 = vmul.f32 0.6931472, %v2477_v15 }
 0x113   : > { %v461_v19 = vmul.f32 0.6931472, %v2479_v17 }
 0x114   : > { %v469_v20 = vsub.f32 %v2909_v36, %v465_v18  }
 0x115   : > { %v2481_v21 = vpop.eup %2480  ;;  %v467_v22 = vsub.f32 %v2912_v37, %v461_v19  }
 0x116   : > { %v2483_v23 = vpop.eup %2482  ;;  %v493_v24 = vmul.f32 0.6931472, %v2481_v21 }
 0x117   : > { %v491_v25 = vmul.f32 0.6931472, %v2483_v23 }
 0x118   : > { %v499_v26 = vsub.f32 %v2920_v0, %v493_v24  }
 0x119   : > { %v2485_v27 = vpop.eup %2484  ;;  %v498_v28 = vsub.f32 %v2923_v3, %v491_v25  }
 0x11a   : > { %v2487_v29 = vpop.eup %2486  ;;  %v497_v30 = vmul.f32 0.6931472, %v2485_v27 }
 0x11b   : > { %v495_v31 = vmul.f32 0.6931472, %v2487_v29 }
 0x11c   : > { %v501_v34 = vsub.f32 %v2926_v1, %v497_v30  }
 0x11d   : > { %v500_v35 = vsub.f32 %v2929_v42, %v495_v31  }
 0x11e LB: >> { %v516_v36 = vmul.f32 1.442695, %v2696_v16  ;;  %v518_v37 = vmul.f32 1.442695, %v2692_v22  ;;  %v520_v38 = vmul.f32 1.442695, %v2688_v14  ;;  %s2700_s23 = sphi %s2967_s23, %s507_s23   ;;  %v2696_v16 = vphi %v466_v16, %v3393_v16   ;;  %v2692_v22 = vphi %v467_v22, %v3392_v22   ;;  %v2688_v14 = vphi %v468_v14, %v3391_v14   ;;  %v2684_v20 = vphi %v469_v20, %v3390_v20   ;;  %v2680_v28 = vphi %v498_v28, %v3389_v28   ;;  %v2676_v26 = vphi %v499_v26, %v3388_v26   ;;  %v2672_v35 = vphi %v500_v35, %v3387_v35   ;;  %v2668_v34 = vphi %v501_v34, %v3386_v34  }
 0x11f   : >> { %v522_v39 = vmul.f32 1.442695, %v2684_v20  ;;  %v543_v40 = vmul.f32 1.442695, %v2680_v28  ;;  %v545_v32 = vmul.f32 1.442695, %v2676_v26 }
 0x120   : >> { %2488 = vpow2.f32 %v516_v36  ;;  %v547_v41 = vmul.f32 1.442695, %v2672_v35  ;;  %v549_v2 = vmul.f32 1.442695, %v2668_v34  ;;  %s507_s23 = sadd.s32 1, %s2700_s23  }
 0x121   : >> { %2490 = vpow2.f32 %v518_v37  ;;  %p504_p12 = scmp.ge.s32.totalorder %s507_s23, 19  }
 0x122   : >> { %2492 = vpow2.f32 %v520_v38  ;;  %vm761_vm1 = vcmask (%p504_p12), 125952   ;;  %vm2703_vm2 = vmmov (%p504_p12), 0   ;;  %vm894_vm3 = vcmask (%p504_p12), 257024  }
 0x123   : >> { %2494 = vpow2.f32 %v522_v39  ;;  %vm1186_vm4 = vcmask (%p504_p12), 253952  }
 0x124   : >> { %2496 = vpow2.f32 %v543_v40 }
 0x125   : >> { %2498 = vpow2.f32 %v545_v32 }
 0x126   : >> { %2500 = vpow2.f32 %v547_v41 }
 0x127   : >> { %2502 = vpow2.f32 %v549_v2 }
 0x12d   : >> { %v2489_v0 = vpop.eup %2488 }
 0x12e   : >> { %v2491_v3 = vpop.eup %2490  ;;  %v524_v1 = vsel %vm347_vm0, %v2489_v0, 0.0 }
 0x12f   : >> { %v2493_v42 = vpop.eup %2492  ;;  %v525_v43 = vsel %vm347_vm0, %v2491_v3, 0.0 }
 0x130   : >> { %v2495_v33 = vpop.eup %2494  ;;  %v526_v44 = vadd.f32 %v525_v43, %v524_v1  ;;  %v527_v8 = vsel %vm347_vm0, %v2493_v42, 0.0 }
 0x131   : >> { %v2497_v7 = vpop.eup %2496  ;;  %v529_v12 = vsel %vm347_vm0, %v2495_v33, 0.0 }
 0x132   : >> { %v2499_v45 = vpop.eup %2498  ;;  %v528_v46 = vadd.f32 %v527_v8, %v526_v44  ;;  %v551_v11 = vsel %vm347_vm0, %v2497_v7, 0.0 }
 0x133   : >> { %v2501_v47 = vpop.eup %2500  ;;  %v552_v48 = vsel %vm347_vm0, %v2499_v45, 0.0 }
 0x134   : >> { %v2503_v49 = vpop.eup %2502  ;;  %v530_v50 = vadd.f32 %v529_v12, %v528_v46  ;;  %v553_v51 = vadd.f32 %v552_v48, %v551_v11  ;;  %v554_v52 = vsel %vm347_vm0, %v2501_v47, 0.0 }
 0x135   : >> { %v556_v53 = vsel %vm347_vm0, %v2503_v49, 0.0 }
 0x136   : >> { %v531_v54 = vrot.slane %v530_v50, 4  ;;  %v555_v55 = vadd.f32 %v554_v52, %v553_v51 }
 0x138   : >> { %v532_v56 = vadd.f32 %v531_v54, %v530_v50  ;;  %v557_v57 = vadd.f32 %v556_v53, %v555_v55 }
 0x13a   : >> { %v533_v58 = vrot.slane %v532_v56, 2  ;;  %v558_v59 = vrot.slane %v557_v57, 4 }
 0x13c   : >> { %v534_v60 = vadd.f32 %v533_v58, %v532_v56  ;;  %v559_v61 = vadd.f32 %v558_v59, %v557_v57 }
 0x13e   : >> { %v535_v62 = vrot.slane %v534_v60, 1  ;;  %v560_v63 = vrot.slane %v559_v61, 2 }
 0x140   : >> { %v536_v4 = vadd.f32 %v535_v62, %v534_v60  ;;  %v561_v5 = vadd.f32 %v560_v63, %v559_v61 }
 0x142   : >> { %2504 = vlog2.f32 %v536_v4  ;;  %v562_v6 = vrot.slane %v561_v5, 1 }
 0x144   : >> { %v563_v9 = vadd.f32 %v562_v6, %v561_v5 }
 0x146   : >> { %2506 = vlog2.f32 %v563_v9 }
 0x14f   : >> { %v2505_v10 = vpop.eup %2504 }
 0x150   : >> { %v538_v13 = vmul.f32 0.6931472, %v2505_v10 }
 0x152   : >> { %v3000_v15 = vsub.f32 %v2688_v14, %v538_v13  ;;  %v3002_v17 = vsub.f32 %v2696_v16, %v538_v13  ;;  %v3004_v18 = vsub.f32 %v2684_v20, %v538_v13  ;;  %v3006_v19 = vsub.f32 %v2692_v22, %v538_v13 }
 0x153   : >> { %v2507_v21 = vpop.eup %2506 }
 0x154   : >> { %v574_v23 = vmul.f32 1.442695, %v3000_v15  ;;  %v570_v24 = vmul.f32 1.442695, %v3002_v17  ;;  %v576_v25 = vmul.f32 1.442695, %v3004_v18 }
 0x155   : >> { %v572_v27 = vmul.f32 1.442695, %v3006_v19  ;;  %v565_v29 = vmul.f32 0.6931472, %v2507_v21  ;;  %v660_v21 = vld [vmem:[%s3377_s4] sm:$0xff] (%p504_p12) }
 0x156   : >> { %2508 = vpow2.f32 %v574_v23 }
 0x157   : >> { %2510 = vpow2.f32 %v570_v24  ;;  %v3013_v14 = vsub.f32 %v2676_v26, %v565_v29  ;;  %v3016_v16 = vsub.f32 %v2680_v28, %v565_v29  ;;  %v3019_v20 = vsub.f32 %v2668_v34, %v565_v29 }
 0x158   : >> { %2512 = vpow2.f32 %v576_v25  ;;  %v3022_v22 = vsub.f32 %v2672_v35, %v565_v29  ;;  %v661_v25 = vld [vmem:[%s3377_s4 + $0x8] sm:$0xff] (%p504_p12) }
 0x159   : >> { %2514 = vpow2.f32 %v572_v27  ;;  %v604_v30 = vmul.f32 1.442695, %v3013_v14  ;;  %v602_v31 = vmul.f32 1.442695, %v3016_v16  ;;  %v608_v36 = vmul.f32 1.442695, %v3019_v20 }
 0x15a   : >> { %v606_v26 = vmul.f32 1.442695, %v3022_v22 }
 0x15b   : >> { %2516 = vpow2.f32 %v604_v30  ;;  %v654_v30 = vld [vmem:[%s3375_s2] sm:$0xff] (%p504_p12) }
 0x15c   : >> { %2518 = vpow2.f32 %v602_v31  ;;  %v655_v31 = vld [vmem:[%s3375_s2 + $0x8] sm:$0xff] (%p504_p12) }
 0x15d   : >> { %2520 = vpow2.f32 %v608_v36 }
 0x15e   : >> { %2522 = vpow2.f32 %v606_v26 }
 0x163   : >> { %v2509_v28 = vpop.eup %2508 }
 0x164   : >> { %v2511_v34 = vpop.eup %2510  ;;  %v584_v37 = vsel %vm347_vm0, %v2509_v28, 0.0 }
 0x165   : >> { %v2513_v38 = vpop.eup %2512  ;;  %585 = vadd.xlane.f32.xlu1 %v584_v37  ;;  %v578_v35 = vsel %vm347_vm0, %v2511_v34, 0.0 }
 0x166   : >> { %v2515_v39 = vpop.eup %2514  ;;  %579 = vadd.xlane.f32.xlu0 %v578_v35  ;;  %v587_v40 = vsel %vm347_vm0, %v2513_v38, 0.0 }
 0x167   : >> { %v581_v32 = vsel %vm347_vm0, %v2515_v39, 0.0 }
 0x168   : >> { %v2517_v41 = vpop.eup %2516 }
 0x169   : >> { %v2519_v2 = vpop.eup %2518  ;;  %588 = vadd.xlane.f32.xlu1 %v587_v40  ;;  %v613_v0 = vsel %vm347_vm0, %v2517_v41, 0.0 }
 0x16a   : >> { %582 = vadd.xlane.f32.xlu0 %v581_v32  ;;  %v2521_v3 = vpop.eup %2520  ;;  %v610_v1 = vsel %vm347_vm0, %v2519_v2, 0.0 }
 0x16b   : >> { %v2523_v42 = vpop.eup %2522  ;;  %v619_v43 = vsel %vm347_vm0, %v2521_v3, 0.0 }
 0x16c   : >> { %v616_v33 = vsel %vm347_vm0, %v2523_v42, 0.0 }
 0x16d   : >> { %614 = vadd.xlane.f32.xlu1 %v613_v0 }
 0x16e   : >> { %611 = vadd.xlane.f32.xlu0 %v610_v1 }
 0x171   : >> { %620 = vadd.xlane.f32.xlu1 %v619_v43 }
 0x172   : >> { %617 = vadd.xlane.f32.xlu0 %v616_v33 }
 0x1ee   : >> { %v586_v44 = vpop.xlane.xlu1 %585 }
 0x1ef   : >> { %2524 = vlog2.f32 %v586_v44  ;;  %v580_v8 = vpop.xlane.xlu0 %579 }
 0x1f0   : >> { %2526 = vlog2.f32 %v580_v8 }
 0x1f2   : >> { %v589_v7 = vpop.xlane.xlu1 %588 }
 0x1f3   : >> { %2528 = vlog2.f32 %v589_v7  ;;  %v583_v12 = vpop.xlane.xlu0 %582 }
 0x1f4   : >> { %2530 = vlog2.f32 %v583_v12  ;;  %v666_v12 = vld [vmem:[%s3379_s6] sm:$0xff] (%p504_p12) }
 0x1f6   : >> { %v615_v45 = vpop.xlane.xlu1 %614 }
 0x1f7   : >> { %2532 = vlog2.f32 %v615_v45  ;;  %v612_v46 = vpop.xlane.xlu0 %611  ;;  %v667_v45 = vld [vmem:[%s3379_s6 + $0x8] sm:$0xff] (%p504_p12) }
 0x1f8   : >> { %2534 = vlog2.f32 %v612_v46 }
 0x1fa   : >> { %v621_v11 = vpop.xlane.xlu1 %620 }
 0x1fb   : >> { %2536 = vlog2.f32 %v621_v11  ;;  %v618_v47 = vpop.xlane.xlu0 %617  ;;  %v682_v11 = vpack.c.bf16 (%p504_p12), %v667_v45, %v666_v12 }
 0x1fc   : >> { %v2525_v48 = vpop.eup %2524  ;;  %2538 = vlog2.f32 %v618_v47  ;;  %v668_v47 = vld [vmem:[%s3379_s6 + $0x10] sm:$0xff] (%p504_p12) }
 0x1fd   : >> { %v2527_v49 = vpop.eup %2526  ;;  %v595_v50 = vmul.f32 0.6931472, %v2525_v48  ;;  %v669_v48 = vld [vmem:[%s3379_s6 + $0x18] sm:$0xff] (%p504_p12) }
 0x1fe   : >> { %v591_v51 = vmul.f32 0.6931472, %v2527_v49  ;;  %v683_v49 = vpack.c.bf16 (%p504_p12), %v669_v48, %v668_v47 }
 0x1ff   : >> { %v600_v52 = vsub.f32 %v3000_v15, %v595_v50   ;;  %v2702_v50 = vmov (%p504_p12), 0.0  }
 0x200   : >> { %v2529_v53 = vpop.eup %2528  ;;  %v598_v54 = vsub.f32 %v3002_v17, %v591_v51   ;;  %v670_v51 = vld [vmem:[%s3379_s6 + $0x20] sm:$0xff] (%p504_p12) }
 0x201   : >> { %v2531_v55 = vpop.eup %2530  ;;  %v597_v56 = vmul.f32 0.6931472, %v2529_v53  ;;  %v638_v37 = vmul.f32 (%p504_p12), 1.442695, %v600_v52 }
 0x202   : >> { %v593_v57 = vmul.f32 0.6931472, %v2531_v55  ;;  %v673_v55 = vld [vmem:[%s3379_s6 + $0x38] sm:$0xff] (%p504_p12) }
 0x203   : >> { %v601_v58 = vsub.f32 %v3004_v18, %v597_v56   ;;  %v662_v18 = vld [vmem:[%s3377_s4 + $0x10] sm:$0xff] (%p504_p12) }
 0x204   : >> { %v2533_v59 = vpop.eup %2532  ;;  %v599_v60 = vsub.f32 %v3006_v19, %v593_v57   ;;  %v663_v19 = vld [vmem:[%s3377_s4 + $0x18] sm:$0xff] (%p504_p12)  ;;  %v674_v57 = vld [vmem:[%s3379_s6 + $0x40] sm:$0xff] (%p504_p12) }
 0x205   : >> { %v2535_v61 = vpop.eup %2534  ;;  %v625_v62 = vmul.f32 0.6931472, %v2533_v59  ;;  %v665_v24 = vpack.c.bf16 (%p504_p12), %v663_v19, %v662_v18  ;;  %v640_v38 = vmul.f32 (%p504_p12), 1.442695, %v601_v58 }
 0x206   : >> { %v623_v63 = vmul.f32 0.6931472, %v2535_v61  ;;  %v677_v61 = vld [vmem:[%s3379_s6 + $0x58] sm:$0xff] (%p504_p12) }
 0x207   : >> { %v631_v4 = vsub.f32 %v3013_v14, %v625_v62   ;;  %v3391_v14 = vmov %v600_v52  ;;  %2175 = vmatprep.subr.bf16.mxu1 (%p504_p12), %v665_v24  ;;  %v671_v52 = vld [vmem:[%s3379_s6 + $0x28] sm:$0xff] (%p504_p12) }
 0x208   : >> { %v2537_v5 = vpop.eup %2536  ;;  %v630_v6 = vsub.f32 %v3016_v16, %v623_v63   ;;  %v3393_v16 = vmov %v598_v54  ;;  %v656_v14 = vld [vmem:[%s3375_s2 + $0x10] sm:$0xff] (%p504_p12)  ;;  %2176 = vmatpush3.bf16.msra.mxu1 (%p504_p12), %v665_v24  ;;  %v684_v53 = vpack.c.bf16 (%p504_p12), %v671_v52, %v670_v51  ;;  %v678_v63 = vld [vmem:[%s3379_s6 + $0x60] sm:$0xff] (%p504_p12) }
 0x209   : >> { %v2539_v9 = vpop.eup %2538  ;;  %v629_v10 = vmul.f32 0.6931472, %v2537_v5  ;;  %v3388_v26 = vmov %v631_v4  ;;  %v644_v27 = vmul.f32 (%p504_p12), 1.442695, %v631_v4  ;;  %v664_v16 = vpack.c.bf16 (%p504_p12), %v661_v25, %v660_v21  ;;  %v679_v4 = vld [vmem:[%s3379_s6 + $0x68] sm:$0xff] (%p504_p12) }
 0x20a   : >> { %v627_v13 = vmul.f32 0.6931472, %v2539_v9  ;;  %v3389_v28 = vmov %v630_v6  ;;  %506 = sbr.rel (!%p504_p12) target bundleno = 286 (0x11e), region = 102  ;;  %v642_v23 = vmul.f32 (%p504_p12), 1.442695, %v630_v6  ;;  %v658_v26 = vpack.c.bf16 (%p504_p12), %v655_v31, %v654_v30  ;;  %v680_v6 = vld [vmem:[%s3379_s6 + $0x70] sm:$0xff] (%p504_p12) }
 0x20b   : >> { %v633_v15 = vsub.f32 %v3019_v20, %v629_v10   ;;  %v3390_v20 = vmov %v601_v58  ;;  %v634_v28 = vmul.f32 (%p504_p12), 1.442695, %v598_v54  ;;  %2177 = vmatprep.subr.bf16.mxu1 (%p504_p12), %v664_v16  ;;  %v672_v54 = vld [vmem:[%s3379_s6 + $0x30] sm:$0xff] (%p504_p12)  ;;  %v675_v58 = vld [vmem:[%s3379_s6 + $0x48] sm:$0xff] (%p504_p12)  ;;  %v688_v5 = vpack.c.bf16 (%p504_p12), %v679_v4, %v678_v63  ;;  %v681_v9 = vld [vmem:[%s3379_s6 + $0x78] sm:$0xff] (%p504_p12) }
 0x20c   : >> { %v632_v17 = vsub.f32 %v3022_v22, %v627_v13   ;;  %v3392_v22 = vmov %v599_v60  ;;  %2540 = vpow2.f32 (%p504_p12), %v642_v23  ;;  %2178 = vmatpush3.bf16.msra.mxu1 (%p504_p12), %v664_v16  ;;  %v685_v56 = vpack.c.bf16 (%p504_p12), %v673_v55, %v672_v54  ;;  %v1188_v30 = vld [vmem:[%s3378_s5] sm:$0x1] (%p504_p12) }
 0x20d   : >> { %v3386_v34 = vmov %v633_v15  ;;  %v648_v20 = vmul.f32 (%p504_p12), 1.442695, %v633_v15  ;;  %v657_v22 = vld [vmem:[%s3375_s2 + $0x18] sm:$0xff] (%p504_p12)  ;;  %2542 = vpow2.f32 (%p504_p12), %v644_v27  ;;  %v686_v59 = vpack.c.bf16 (%p504_p12), %v675_v58, %v674_v57 }
 0x20e   : >> { %v3387_v35 = vmov %v632_v17  ;;  %v646_v29 = vmul.f32 (%p504_p12), 1.442695, %v632_v17  ;;  %v659_v36 = vpack.c.bf16 (%p504_p12), %v657_v22, %v656_v14  ;;  %v636_v34 = vmul.f32 (%p504_p12), 1.442695, %v599_v60  ;;  %v676_v60 = vld [vmem:[%s3379_s6 + $0x50] sm:$0xff] (%p504_p12) }
 0x20f   : > { %v687_v62 = vpack.c.bf16 %v677_v61, %v676_v60  ;;  %v689_v10 = vpack.c.bf16 %v681_v9, %v680_v6  ;;  %v1100_v22 = vld [vmem:[%s3376_s3] sm:$0x1] }
 0x210   : > { %2544 = vpow2.f32 %v646_v29  ;;  %2167 = vmatprep.subr.bf16.mxu0 %v659_v36 }
 0x211   : > { %2546 = vpow2.f32 %v648_v20  ;;  %2168 = vmatpush3.bf16.msra.mxu0 %v659_v36 }
 0x212   : > { %2548 = vpow2.f32 %v634_v28  ;;  %2169 = vmatprep.subr.bf16.mxu0 %v658_v26 }
 0x213   : > { %2550 = vpow2.f32 %v636_v34 }
 0x214   : > { %2552 = vpow2.f32 %v638_v37 }
 0x215   : > { %2554 = vpow2.f32 %v640_v38  ;;  %2170 = vmatpush3.bf16.msra.mxu0 %v658_v26 }
 0x219   : > { %v3087_v35 = vpop.eup %2540 }
 0x21a   : > { %v3089_v39 = vpop.eup %2542 }
 0x21b   : > { %v652_v32 = vpack.c.bf16 %v3089_v39, %v3087_v35 }
 0x21d   : > { %v3091_v40 = vpop.eup %2544  ;;  %2179 = vmatprep.mubr.msk.bf16.mxu1 %vm347_vm0, %v652_v32  ;;  %v767_v7 = vsel %vm347_vm0, %v652_v32, 0 }
 0x21e   : > { %v3095_v41 = vpop.eup %2546 }
 0x21f   : > { %v3097_v2 = vpop.eup %2548  ;;  %v653_v0 = vpack.c.bf16 %v3095_v41, %v3091_v40 }
 0x220   : > { %v3102_v3 = vpop.eup %2550 }
 0x221   : > { %v3104_v1 = vpop.eup %2552  ;;  %2180 = vmatmul.mubr.msk.bf16.vlgmr.msra.gmra.mxu1 %vm347_vm0, %v653_v0  ;;  %v650_v42 = vpack.c.bf16 %v3102_v3, %v3097_v2  ;;  %2307 = vmatprep.subr.msk.bf16.mxu1 %vm347_vm0, %v653_v0  ;;  %v770_v43 = vsel %vm347_vm0, %v653_v0, 0 }
 0x222   : > { %v3111_v33 = vpop.eup %2554  ;;  %2192 = vmatpush3.bf16.xpose.msra.mxu1 %v770_v43  ;;  %2195 = vmatprep.mubr.msk.bf16.mxu1 %vm347_vm0, %v682_v11 }
 0x223   : > { %2171 = vmatprep.mubr.msk.bf16.mxu0 %vm347_vm0, %v650_v42  ;;  %v651_v44 = vpack.c.bf16 %v3111_v33, %v3104_v1  ;;  %2308 = vmatprep.subr.msk.bf16.mxu1 %vm347_vm0, %v652_v32  ;;  %v691_v46 = vsel %vm347_vm0, %v650_v42, 0 }
 0x225   : > { %2172 = vmatmul.mubr.msk.bf16.vlgmr.msra.gmra.mxu0 %vm347_vm0, %v651_v44  ;;  %2305 = vmatprep.subr.msk.bf16.mxu0 %vm347_vm0, %v651_v44  ;;  %v694_v8 = vsel %vm347_vm0, %v651_v44, 0 }
 0x226   : > { %2184 = vmatpush3.bf16.xpose.msra.mxu0 %v694_v8 }
 0x227   : > { %2306 = vmatprep.subr.msk.bf16.mxu0 %vm347_vm0, %v650_v42 }
 0x22a   : > { %2194 = vmatpush3.bf16.xpose.msra.mxu1 %v767_v7 }
 0x22e   : > { %2186 = vmatpush3.bf16.xpose.msra.mxu0 %v691_v46 }
 0x22f   : > { %2211 = vmatprep.subr.mxu0 %v2702_v50 }
 0x231   : > { %2196 = vmatmul.mubr.msk.bf16.vlgmr.msra.gmra.mxu1 %vm347_vm0, %v683_v49 }
 0x232   : > { %2199 = vmatprep.mubr.msk.bf16.mxu1 %vm347_vm0, %v684_v53 }
 0x239   : > { %2200 = vmatmul.mubr.msk.bf16.gmra.mxu1 %vm347_vm0, %v685_v56 }
 0x23a   : > { %2203 = vmatprep.mubr.msk.bf16.mxu1 %vm347_vm0, %v686_v59 }
 0x241   : > { %2204 = vmatmul.mubr.msk.bf16.gmra.mxu1 %vm347_vm0, %v687_v62 }
 0x242   : > { %2207 = vmatprep.mubr.msk.bf16.mxu1 %vm347_vm0, %v688_v5 }
 0x249   : > { %2208 = vmatmul.mubr.msk.bf16.gmra.mxu1 %vm347_vm0, %v689_v10 }
 0x2e1   : > { %v2181_v13 = vpop.f32.mrf.mxu1 }
 0x2e3   : > { %v806_v15 = vpop.f32.mrf.mxu1 }
 0x2e5   : > { %v2182_v17 = vpop.f32.mrf.mxu1  ;;  %v2173_v18 = vpop.f32.mrf.mxu0 }
 0x2e6   : > { %v2076_v19 = vpack.c.bf16 %v2173_v18, %v2173_v18  ;;  %v822_v27 = vpack.c.bf16 %v2182_v17, %v2181_v13 }
 0x2e7   : > { %v809_v21 = vpop.f32.mrf.mxu1  ;;  %v730_v23 = vpop.f32.mrf.mxu0 }
 0x2e8   : > { %v821_v24 = vpack.c.bf16 %v809_v21, %v806_v15  ;;  %764 = vst.msk [vmem:[#allocation2 + $0x8] sm:$0xf] %vm761_vm1, %v2076_v19  ;;  %v2074_v25 = vpack.c.bf16 %v730_v23, %v730_v23 }
 0x2e9   : > { %v2174_v29 = vpop.f32.mrf.mxu0 }
 0x2ea   : > { %2187 = vmatprep.mubr.msk.bf16.mxu0 %vm347_vm0, %v821_v24  ;;  %762 = vst.msk [vmem:[#allocation2] sm:$0xf] %vm761_vm1, %v2074_v25  ;;  %v2077_v14 = vpack.c.bf16 %v2174_v29, %v2174_v29 }
 0x2eb   : > { %2188 = vmatmul.mubr.msk.bf16.vlgmr.msra.gmra.mxu0 %vm347_vm0, %v822_v27  ;;  %v733_v16 = vpop.f32.mrf.mxu0 }
 0x2ec   : > { %2212 = vmatpush3.xpose.msk.msra.mxu0 %vm347_vm0, %v3111_v33  ;;  %2219 = vmatprep.mubr.msk.f32.mxu0 %vm2703_vm2, %v2702_v50  ;;  %765 = vst.msk [vmem:[#allocation2 + $0xc] sm:$0xf] %vm761_vm1, %v2077_v14  ;;  %v2075_v20 = vpack.c.bf16 %v733_v16, %v733_v16 }
 0x2ed   : > { %2213 = vmatprep.subr.mxu0 %v2702_v50 }
 0x2ee   : > { %763 = vst.msk [vmem:[#allocation2 + $0x4] sm:$0xf] %vm761_vm1, %v2075_v20 }
 0x2f0   : > { %2214 = vmatpush3.xpose.msk.msra.mxu0 %vm347_vm0, %v3104_v1 }
 0x2f1   : > { %2215 = vmatprep.subr.mxu0 %v2702_v50  ;;  %v2197_v31 = vpop.f32.mrf.mxu1 }
 0x2f2   : > { %v2084_v36 = vpack.c.bf16 %v2197_v31, %v2197_v31 }
 0x2f3   : > { %v957_v26 = vpop.f32.mrf.mxu1 }
 0x2f4   : > { %2216 = vmatpush3.xpose.msk.msra.mxu0 %vm347_vm0, %v3102_v3  ;;  %1086 = vst.msk [vmem:[#allocation4 + $0x8] sm:$0xf] %vm894_vm3, %v2084_v36  ;;  %v2082_v28 = vpack.c.bf16 %v957_v26, %v957_v26 }
 0x2f5   : > { %2217 = vmatprep.subr.mxu0 %v2702_v50  ;;  %v2198_v34 = vpop.f32.mrf.mxu1 }
 0x2f6   : > { %1084 = vst.msk [vmem:[#allocation4] sm:$0xf] %vm894_vm3, %v2082_v28  ;;  %v2085_v37 = vpack.c.bf16 %v2198_v34, %v2198_v34 }
 0x2f7   : > { %v960_v38 = vpop.f32.mrf.mxu1 }
 0x2f8   : > { %2218 = vmatpush3.xpose.msk.msra.mxu0 %vm347_vm0, %v3097_v2  ;;  %1087 = vst.msk [vmem:[#allocation4 + $0xc] sm:$0xf] %vm894_vm3, %v2085_v37 }
 0x2f9   : > { %2222 = vmatprep.subr.mxu0 %v2702_v50 }
 0x2fb   : > { %2220 = vmatmul.mubr.msk.f32.vlgmr.msra.gmra.mxu0 %vm347_vm0, %v1100_v22 }
 0x2fc   : > { %2223 = vmatpush3.xpose.msk.msra.mxu0 %vm347_vm0, %v3095_v41  ;;  %2230 = vmatprep.mubr.msk.f32.mxu0 %vm2703_vm2, %v2702_v50 }
 0x2fd   : > { %2224 = vmatprep.subr.mxu0 %v2702_v50 }
 0x300   : > { %2225 = vmatpush3.xpose.msk.msra.mxu0 %vm347_vm0, %v3091_v40 }
 0x301   : > { %2226 = vmatprep.subr.mxu0 %v2702_v50 }
 0x304   : > { %2227 = vmatpush3.xpose.msk.msra.mxu0 %vm347_vm0, %v3089_v39  ;;  %v2201_v39 = vpop.f32.mrf.mxu1 }
 0x305   : > { %2228 = vmatprep.subr.mxu0 %v2702_v50  ;;  %v2088_v40 = vpack.c.bf16 %v2201_v39, %v2201_v39 }
 0x306   : > { %v973_v32 = vpop.f32.mrf.mxu1 }
 0x307   : > { %1090 = vst.msk [vmem:[#allocation4 + $0x18] sm:$0xf] %vm894_vm3, %v2088_v40  ;;  %v2086_v41 = vpack.c.bf16 %v973_v32, %v973_v32 }
 0x308   : > { %2229 = vmatpush3.xpose.msk.msra.mxu0 %vm347_vm0, %v3087_v35  ;;  %v2083_v35 = vpack.c.bf16 %v960_v38, %v960_v38  ;;  %v2202_v2 = vpop.f32.mrf.mxu1 }
 0x309   : > { %1088 = vst.msk [vmem:[#allocation4 + $0x10] sm:$0xf] %vm894_vm3, %v2086_v41  ;;  %v2089_v0 = vpack.c.bf16 %v2202_v2, %v2202_v2 }
 0x30a   : > { %1085 = vst.msk [vmem:[#allocation4 + $0x4] sm:$0xf] %vm894_vm3, %v2083_v35  ;;  %v976_v3 = vpop.f32.mrf.mxu1 }
 0x30b   : > { %2231 = vmatmul.mubr.msk.f32.vlgmr.msra.gmra.mxu0 %vm347_vm0, %v1188_v30  ;;  %v2087_v1 = vpack.c.bf16 %v976_v3, %v976_v3  ;;  %1091 = vst.msk [vmem:[#allocation4 + $0x1c] sm:$0xf] %vm894_vm3, %v2089_v0 }
 0x30c   : > { %v2205_v42 = vpop.f32.mrf.mxu1 }
 0x30d   : > { %1089 = vst.msk [vmem:[#allocation4 + $0x14] sm:$0xf] %vm894_vm3, %v2087_v1  ;;  %v2092_v43 = vpack.c.bf16 %v2205_v42, %v2205_v42 }
 0x30e   : > { %v989_v33 = vpop.f32.mrf.mxu1 }
 0x30f   : > { %1094 = vst.msk [vmem:[#allocation4 + $0x28] sm:$0xf] %vm894_vm3, %v2092_v43  ;;  %v2090_v44 = vpack.c.bf16 %v989_v33, %v989_v33 }
 0x310   : > { %v2206_v8 = vpop.f32.mrf.mxu1 }
 0x311   : > { %1092 = vst.msk [vmem:[#allocation4 + $0x20] sm:$0xf] %vm894_vm3, %v2090_v44  ;;  %v2093_v7 = vpack.c.bf16 %v2206_v8, %v2206_v8 }
 0x312   : > { %v992_v12 = vpop.f32.mrf.mxu1 }
 0x313   : > { %1095 = vst.msk [vmem:[#allocation4 + $0x2c] sm:$0xf] %vm894_vm3, %v2093_v7  ;;  %v2091_v45 = vpack.c.bf16 %v992_v12, %v992_v12 }
 0x314   : > { %v2209_v46 = vpop.f32.mrf.mxu1 }
 0x315   : > { %1093 = vst.msk [vmem:[#allocation4 + $0x24] sm:$0xf] %vm894_vm3, %v2091_v45  ;;  %v2096_v11 = vpack.c.bf16 %v2209_v46, %v2209_v46 }
 0x316   : > { %v1005_v47 = vpop.f32.mrf.mxu1 }
 0x317   : > { %1098 = vst.msk [vmem:[#allocation4 + $0x38] sm:$0xf] %vm894_vm3, %v2096_v11  ;;  %v2094_v48 = vpack.c.bf16 %v1005_v47, %v1005_v47 }
 0x318   : > { %v2210_v49 = vpop.f32.mrf.mxu1 }
 0x319   : > { %1096 = vst.msk [vmem:[#allocation4 + $0x30] sm:$0xf] %vm894_vm3, %v2094_v48  ;;  %v2097_v50 = vpack.c.bf16 %v2210_v49, %v2210_v49 }
 0x31a   : > { %v1008_v51 = vpop.f32.mrf.mxu1 }
 0x31b   : > { %1099 = vst.msk [vmem:[#allocation4 + $0x3c] sm:$0xf] %vm894_vm3, %v2097_v50  ;;  %v2095_v52 = vpack.c.bf16 %v1008_v51, %v1008_v51 }
 0x31d   : > { %1097 = vst.msk [vmem:[#allocation4 + $0x34] sm:$0xf] %vm894_vm3, %v2095_v52 }
 0x3ab   : > { %v2189_v53 = vpop.f32.mrf.mxu0 }
 0x3ac   : > { %v2080_v54 = vpack.c.bf16 %v2189_v53, %v2189_v53 }
 0x3ad   : > { %v863_v55 = vpop.f32.mrf.mxu0 }
 0x3ae   : > { %897 = vst.msk [vmem:[#allocation3 + $0x8] sm:$0xf] %vm894_vm3, %v2080_v54  ;;  %v2078_v56 = vpack.c.bf16 %v863_v55, %v863_v55 }
 0x3af   : > { %v2190_v57 = vpop.f32.mrf.mxu0 }
 0x3b0   : > { %895 = vst.msk [vmem:[#allocation3] sm:$0xf] %vm894_vm3, %v2078_v56  ;;  %v2081_v58 = vpack.c.bf16 %v2190_v57, %v2190_v57 }
 0x3b1   : > { %v866_v59 = vpop.f32.mrf.mxu0 }
 0x3b2   : > { %898 = vst.msk [vmem:[#allocation3 + $0xc] sm:$0xf] %vm894_vm3, %v2081_v58  ;;  %v2079_v60 = vpack.c.bf16 %v866_v59, %v866_v59 }
 0x3b4   : > { %896 = vst.msk [vmem:[#allocation3 + $0x4] sm:$0xf] %vm894_vm3, %v2079_v60 }
 0x3bb   : > { %v1182_v61 = vpop.f32.mrf.mxu0 }
 0x3bc   : > { %1187 = vst.msk [vmem:[#allocation5] sm:$0x1] %vm1186_vm4, %v1182_v61 }
 0x3bd   : > { %v2221_v62 = vpop.f32.mrf.mxu0 }
 0x3cb   : > { %v1270_v63 = vpop.f32.mrf.mxu0 }
 0x3cc   : > { %1274 = vst.msk [vmem:[#allocation6] sm:$0x1] %vm1186_vm4, %v1270_v63 }
 0x3cd   : > { %v2232_v4 = vpop.f32.mrf.mxu0 }
 0x3ce PF: > { %v2556_v5 = vld [vmem:[#allocation2 + $0x8] sm:$0xff]   ;;  %vm1320_vm5 = vcmask 130048   ;;  %v2557_v6 = vld [vmem:[#allocation2] sm:$0xff]   ;;  %v2558_v18 = vld [vmem:[#allocation3 + $0x8] sm:$0xff]   ;;  %vm1493_vm6 = vcmask 261120   ;;  %s2098_s21 = sshll.u32 %s2778_s13, 11 }
 0x3cf   : > { %2309 = vmatprep.subr.msk.bf16.mxu1 %vm1320_vm5, %v2556_v5  ;;  %v1349_v9 = vsel %vm1320_vm5, %v2556_v5, 0  ;;  %v1275_v10 = vld [vmem:[%s2812_s27] sm:$0xff]  ;;  %v1276_v13 = vld [vmem:[%s2812_s27 + $0x8] sm:$0xff]  ;;  %v1346_v17 = vsel %vm1320_vm5, %v2557_v6, 0  ;;  %v1277_v19 = vld [vmem:[%s2812_s27 + $0x10] sm:$0xff]  ;;  %v1522_v29 = vsel %vm1493_vm6, %v2558_v18, 0  ;;  %s3325_s17 = scalar_lea.hbm %s3382_s9, %s2098_s21 }
 0x3d0   : > { %2234 = vmatpush3.bf16.xpose.msra.mxu1 %v1349_v9  ;;  %v1291_v15 = vpack.c.bf16 %v1276_v13, %v1275_v10  ;;  %v1278_v21 = vld [vmem:[%s2812_s27 + $0x18] sm:$0xff]  ;;  %v1279_v23 = vld [vmem:[%s2812_s27 + $0x20] sm:$0xff]  ;;  %v1280_v24 = vld [vmem:[%s2812_s27 + $0x28] sm:$0xff]  ;;  %s1883_s29 = sshll.u32 %s2814_s28, 4  ;;  %s3394_s22 = sand.u32 1, %s2656_s10   ;;  %s3327_s29 = int_to_ptr.vmem [resolvable:$true] %s1883_s29 }
 0x3d1   : > { %2310 = vmatprep.subr.msk.bf16.mxu1 %vm1320_vm5, %v2557_v6  ;;  %v1292_v25 = vpack.c.bf16 %v1278_v21, %v1277_v19  ;;  %v1293_v27 = vpack.c.bf16 %v1280_v24, %v1279_v23  ;;  %v2559_v14 = vld [vmem:[#allocation3] sm:$0xff]   ;;  %v1282_v20 = vld [vmem:[%s2812_s27 + $0x38] sm:$0xff]  ;;  %v1283_v22 = vld [vmem:[%s2812_s27 + $0x40] sm:$0xff]  ;;  %s3333_s13 = scalar_lea.sflag [#allocation8], %s3394_s22  ;;  %s2568_s23 = scalar_lea.vmem %s3327_s29, 2048 }
 0x3d2   : > { %2237 = vmatprep.mubr.msk.bf16.mxu1 %vm1320_vm5, %v1291_v15  ;;  %v1281_v16 = vld [vmem:[%s2812_s27 + $0x30] sm:$0xff]  ;;  %v1284_v30 = vld [vmem:[%s2812_s27 + $0x48] sm:$0xff]  ;;  %v1519_v26 = vsel %vm1493_vm6, %v2559_v14, 0  ;;  %v1286_v34 = vld [vmem:[%s2812_s27 + $0x58] sm:$0xff]  ;;  %p2569_p13 = scmp.ne.s32.totalorder %s3327_s29, %s2568_s23  ;;  %s2704_s24 = smov [#allocation7]  }
 0x3d3   : > { %v1294_v31 = vpack.c.bf16 %v1282_v20, %v1281_v16  ;;  %v1295_v36 = vpack.c.bf16 %v1284_v30, %v1283_v22  ;;  %v1285_v28 = vld [vmem:[%s2812_s27 + $0x50] sm:$0xff]  ;;  %v1287_v37 = vld [vmem:[%s2812_s27 + $0x60] sm:$0xff]  ;;  %v1288_v38 = vld [vmem:[%s2812_s27 + $0x68] sm:$0xff]  ;;  %s2572_s25 = sshll.u32 %s2704_s24, 4  ;;  %s2573_s25 = int_to_ptr.vmem [resolvable:$false] %s2572_s25 }
 0x3d4   : > { %v1296_v35 = vpack.c.bf16 %v1286_v34, %v1285_v28  ;;  %v1297_v39 = vpack.c.bf16 %v1288_v38, %v1287_v37  ;;  %v1289_v40 = vld [vmem:[%s2812_s27 + $0x70] sm:$0xff]  ;;  %v1290_v32 = vld [vmem:[%s2812_s27 + $0x78] sm:$0xff]  ;;  %v2562_v42 = vld [vmem:[#allocation4 + $0x28] sm:$0xff]   ;;  %p2570_p0 = pnand %p2569_p13, %p2795_p5  ;;  %s2574_s27 = scalar_lea.vmem %s2573_s25, 4096 }
 0x3d5   : > { %v1298_v41 = vpack.c.bf16 %v1290_v32, %v1289_v40  ;;  %v2560_v2 = vld [vmem:[#allocation4 + $0x38] sm:$0xff]   ;;  %v2561_v0 = vld [vmem:[#allocation4 + $0x30] sm:$0xff]   ;;  %v1748_v43 = vsel %vm1493_vm6, %v2562_v42, 0  ;;  %v2563_v33 = vld [vmem:[#allocation4 + $0x20] sm:$0xff]   ;;  %p2575_p2 = scmp.lt.s32.totalorder %s3327_s29, %s2573_s25  ;;  %p2576_p3 = scmp.lt.s32.totalorder %s2574_s27, %s2568_s23 }
 0x3d6   : > { %2313 = vmatprep.subr.msk.bf16.mxu0 %vm1493_vm6, %v2560_v2  ;;  %v1754_v3 = vsel %vm1493_vm6, %v2560_v2, 0  ;;  %v1751_v1 = vsel %vm1493_vm6, %v2561_v0, 0  ;;  %v1745_v44 = vsel %vm1493_vm6, %v2563_v33, 0  ;;  %v2564_v8 = vld [vmem:[#allocation4 + $0x18] sm:$0xff]   ;;  %v2565_v12 = vld [vmem:[#allocation4 + $0x10] sm:$0xff]   ;;  %v2566_v46 = vld [vmem:[#allocation4 + $0x8] sm:$0xff]   ;;  %p2571_p1 = pneg %p2570_p0 }
 0x3d7   : > { %2274 = vmatpush3.bf16.xpose.msra.mxu0 %v1754_v3  ;;  %v1742_v7 = vsel %vm1493_vm6, %v2564_v8, 0  ;;  %v1739_v45 = vsel %vm1493_vm6, %v2565_v12, 0  ;;  %v1736_v11 = vsel %vm1493_vm6, %v2566_v46, 0  ;;  %v2030_v49 = vld [vmem:[#allocation5] ss:$0 sm:$0xff]  ;;  %p2577_p4 = por %p2576_p3, %p2575_p2 }
 0x3d8   : > { %2236 = vmatpush3.bf16.xpose.msra.mxu1 %v1346_v17  ;;  %2314 = vmatprep.subr.msk.bf16.mxu0 %vm1493_vm6, %v2561_v0 }
 0x3d9   : > { %2311 = vmatprep.subr.msk.bf16.mxu1 %vm1493_vm6, %v2558_v18  ;;  %p2578_p7 = pnand %p2577_p4, %p2571_p1 }
 0x3df   : > { %2238 = vmatmul.mubr.msk.bf16.vlgmr.msra.gmra.mxu1 %vm1320_vm5, %v1292_v25  ;;  %2276 = vmatpush3.bf16.xpose.msra.mxu0 %v1751_v1 }
 0x3e0   : > { %2241 = vmatprep.mubr.msk.bf16.mxu1 %vm1320_vm5, %v1293_v27  ;;  %2254 = vmatpush3.bf16.xpose.msra.mxu1 %v1522_v29 }
 0x3e1   : > { %2312 = vmatprep.subr.msk.bf16.mxu1 %vm1493_vm6, %v2559_v14  ;;  %2315 = vmatprep.subr.msk.bf16.mxu0 %vm1493_vm6, %v2562_v42 }
 0x3e7   : > { %2242 = vmatmul.mubr.msk.bf16.gmra.mxu1 %vm1320_vm5, %v1294_v31  ;;  %2278 = vmatpush3.bf16.xpose.msra.mxu0 %v1748_v43 }
 0x3e8   : > { %2245 = vmatprep.mubr.msk.bf16.mxu1 %vm1320_vm5, %v1295_v36  ;;  %2256 = vmatpush3.bf16.xpose.msra.mxu1 %v1519_v26 }
 0x3e9   : > { %2316 = vmatprep.subr.msk.bf16.mxu0 %vm1493_vm6, %v2563_v33 }
 0x3ef   : > { %2246 = vmatmul.mubr.msk.bf16.gmra.mxu1 %vm1320_vm5, %v1296_v35  ;;  %2280 = vmatpush3.bf16.xpose.msra.mxu0 %v1745_v44  ;;  %v2567_v44 = vld [vmem:[#allocation4] sm:$0xff]  }
 0x3f0   : > { %2249 = vmatprep.mubr.msk.bf16.mxu1 %vm1320_vm5, %v1297_v39  ;;  %2317 = vmatprep.subr.msk.bf16.mxu0 %vm1493_vm6, %v2564_v8  ;;  %v1733_v8 = vsel %vm1493_vm6, %v2567_v44, 0 }
 0x3f7   : > { %2250 = vmatmul.mubr.msk.bf16.gmra.mxu1 %vm1320_vm5, %v1298_v41  ;;  %2282 = vmatpush3.bf16.xpose.msra.mxu0 %v1742_v7 }
 0x3f8   : > { %2318 = vmatprep.subr.msk.bf16.mxu0 %vm1493_vm6, %v2565_v12 }
 0x3ff   : > { %2284 = vmatpush3.bf16.xpose.msra.mxu0 %v1739_v45  ;;  %v2041_v45 = vld [vmem:[#allocation6] ss:$0 sm:$0xff] }
 0x400   : > { %2319 = vmatprep.subr.msk.bf16.mxu0 %vm1493_vm6, %v2566_v46 }
 0x407   : > { %2286 = vmatpush3.bf16.xpose.msra.mxu0 %v1736_v11 }
 0x408   : > { %2320 = vmatprep.subr.msk.bf16.mxu0 %vm1493_vm6, %v2567_v44 }
 0x40f   : > { %2288 = vmatpush3.bf16.xpose.msra.mxu0 %v1733_v8 }
 0x49f   : > { %v2239_v47 = vpop.f32.mrf.mxu1 }
 0x4a0   : > { %v1394_v53 = vadd.f32 %v2239_v47, %v2030_v49 }
 0x4a1   : > { %v1385_v48 = vpop.f32.mrf.mxu1 }
 0x4a2   : > { %v1386_v51 = vadd.f32 %v2030_v49, %v1385_v48  ;;  %v1450_v60 = vmax.f32 %v1394_v53, 0.0 }
 0x4a3   : > { %v2240_v50 = vpop.f32.mrf.mxu1 }
 0x4a4   : > { %v1397_v52 = vadd.f32 %v2240_v50, %v2030_v49  ;;  %v1448_v58 = vmax.f32 %v1386_v51, 0.0 }
 0x4a5   : > { %v1388_v54 = vpop.f32.mrf.mxu1 }
 0x4a6   : > { %v1389_v55 = vadd.f32 %v2030_v49, %v1388_v54  ;;  %v1451_v56 = vmax.f32 %v1397_v52, 0.0 }
 0x4a7   : > { %v2243_v57 = vpop.f32.mrf.mxu1 }
 0x4a8   : > { %v1449_v59 = vmax.f32 %v1389_v55, 0.0  ;;  %v1465_v63 = vpack.c.bf16 %v1451_v56, %v1450_v60  ;;  %v1410_v9 = vadd.f32 %v2243_v57, %v2030_v49 }
 0x4a9   : > { %v1401_v61 = vpop.f32.mrf.mxu1 }
 0x4aa   : > { %v1464_v62 = vpack.c.bf16 %v1449_v59, %v1448_v58  ;;  %v1402_v5 = vadd.f32 %v2030_v49, %v1401_v61  ;;  %v1454_v21 = vmax.f32 %v1410_v9, 0.0 }
 0x4ab   : > { %v2244_v4 = vpop.f32.mrf.mxu1 }
 0x4ac   : > { %v1413_v6 = vadd.f32 %v2244_v4, %v2030_v49  ;;  %2257 = vmatprep.mubr.msk.bf16.mxu1 %vm1493_vm6, %v1464_v62  ;;  %v1452_v18 = vmax.f32 %v1402_v5, 0.0 }
 0x4ad   : > { %v1404_v10 = vpop.f32.mrf.mxu1  ;;  %2258 = vmatmul.mubr.msk.bf16.vlgmr.msra.gmra.mxu1 %vm1493_vm6, %v1465_v63 }
 0x4ae   : > { %v1405_v13 = vadd.f32 %v2030_v49, %v1404_v10  ;;  %v1455_v15 = vmax.f32 %v1413_v6, 0.0 }
 0x4af   : > { %v2247_v17 = vpop.f32.mrf.mxu1 }
 0x4b0   : > { %v1453_v19 = vmax.f32 %v1405_v13, 0.0  ;;  %v1467_v25 = vpack.c.bf16 %v1455_v15, %v1454_v21  ;;  %v1426_v16 = vadd.f32 %v2247_v17, %v2030_v49 }
 0x4b1   : > { %v1417_v23 = vpop.f32.mrf.mxu1 }
 0x4b2   : > { %v1466_v24 = vpack.c.bf16 %v1453_v19, %v1452_v18  ;;  %v1418_v29 = vadd.f32 %v2030_v49, %v1417_v23  ;;  %v1458_v28 = vmax.f32 %v1426_v16, 0.0 }
 0x4b3   : > { %v2248_v27 = vpop.f32.mrf.mxu1 }
 0x4b4   : > { %v1429_v14 = vadd.f32 %v2248_v27, %v2030_v49  ;;  %2261 = vmatprep.mubr.msk.bf16.mxu1 %vm1493_vm6, %v1466_v24  ;;  %v1456_v36 = vmax.f32 %v1418_v29, 0.0 }
 0x4b5   : > { %v1420_v20 = vpop.f32.mrf.mxu1  ;;  %2262 = vmatmul.mubr.msk.bf16.gmra.mxu1 %vm1493_vm6, %v1467_v25 }
 0x4b6   : > { %v1421_v22 = vadd.f32 %v2030_v49, %v1420_v20  ;;  %v1459_v30 = vmax.f32 %v1429_v14, 0.0 }
 0x4b7   : > { %v2251_v31 = vpop.f32.mrf.mxu1 }
 0x4b8   : > { %v1457_v26 = vmax.f32 %v1421_v22, 0.0  ;;  %v1469_v38 = vpack.c.bf16 %v1459_v30, %v1458_v28  ;;  %v1442_v32 = vadd.f32 %v2251_v31, %v2030_v49 }
 0x4b9   : > { %v1433_v34 = vpop.f32.mrf.mxu1 }
 0x4ba   : > { %v1468_v37 = vpack.c.bf16 %v1457_v26, %v1456_v36  ;;  %v1434_v39 = vadd.f32 %v2030_v49, %v1433_v34  ;;  %v1462_v42 = vmax.f32 %v1442_v32, 0.0 }
 0x4bb   : > { %v2252_v35 = vpop.f32.mrf.mxu1 }
 0x4bc   : > { %v1445_v40 = vadd.f32 %v2252_v35, %v2030_v49  ;;  %2265 = vmatprep.mubr.msk.bf16.mxu1 %vm1493_vm6, %v1468_v37  ;;  %v1460_v3 = vmax.f32 %v1434_v39, 0.0 }
 0x4bd   : > { %v1436_v41 = vpop.f32.mrf.mxu1  ;;  %2266 = vmatmul.mubr.msk.bf16.gmra.mxu1 %vm1493_vm6, %v1469_v38 }
 0x4be   : > { %v1437_v2 = vadd.f32 %v2030_v49, %v1436_v41  ;;  %v1463_v0 = vmax.f32 %v1445_v40, 0.0 }
 0x4c0   : > { %v1461_v1 = vmax.f32 %v1437_v2, 0.0  ;;  %v1471_v33 = vpack.c.bf16 %v1463_v0, %v1462_v42 }
 0x4c2   : > { %v1470_v43 = vpack.c.bf16 %v1461_v1, %v1460_v3  ;;  %v2052_v3 = vld [vmem:[%s3380_s7] ss:$0 sm:$0xff] }
 0x4c4   : > { %2269 = vmatprep.mubr.msk.bf16.mxu1 %vm1493_vm6, %v1470_v43 }
 0x4c5   : > { %2270 = vmatmul.mubr.msk.bf16.gmra.mxu1 %vm1493_vm6, %v1471_v33 }
 0x56d   : > { %v2259_v7 = vpop.f32.mrf.mxu1 }
 0x56e   : > { %v1567_v48 = vadd.f32 %v2259_v7, %v2041_v45 }
 0x56f   : > { %v1558_v12 = vpop.f32.mrf.mxu1 }
 0x570   : > { %v1559_v11 = vadd.f32 %v2041_v45, %v1558_v12  ;;  %v1623_v55 = vmax.f32 %v1567_v48, 0.0 }
 0x571   : > { %v2260_v46 = vpop.f32.mrf.mxu1 }
 0x572   : > { %v1570_v47 = vadd.f32 %v2260_v46, %v2041_v45  ;;  %v1621_v53 = vmax.f32 %v1559_v11, 0.0 }
 0x573   : > { %v1561_v49 = vpop.f32.mrf.mxu1 }
 0x574   : > { %v1562_v50 = vadd.f32 %v2041_v45, %v1561_v49  ;;  %v1624_v51 = vmax.f32 %v1570_v47, 0.0 }
 0x575   : > { %v2263_v52 = vpop.f32.mrf.mxu1 }
 0x576   : > { %v1622_v54 = vmax.f32 %v1562_v50, 0.0  ;;  %v1638_v58 = vpack.c.bf16 %v1624_v51, %v1623_v55  ;;  %v1583_v62 = vadd.f32 %v2263_v52, %v2041_v45 }
 0x577   : > { %v1574_v56 = vpop.f32.mrf.mxu1 }
 0x578   : > { %v1637_v57 = vpack.c.bf16 %v1622_v54, %v1621_v53  ;;  %v1575_v60 = vadd.f32 %v2041_v45, %v1574_v56  ;;  %v1627_v13 = vmax.f32 %v1583_v62, 0.0 }
 0x579   : > { %v2264_v59 = vpop.f32.mrf.mxu1 }
 0x57a   : > { %v1586_v61 = vadd.f32 %v2264_v59, %v2041_v45  ;;  %2289 = vmatprep.mubr.msk.bf16.mxu0 %vm1493_vm6, %v1637_v57  ;;  %v1625_v9 = vmax.f32 %v1575_v60, 0.0 }
 0x57b   : > { %v1577_v63 = vpop.f32.mrf.mxu1  ;;  %2290 = vmatmul.mubr.msk.bf16.vlgmr.msra.gmra.mxu0 %vm1493_vm6, %v1638_v58 }
 0x57c   : > { %v1578_v4 = vadd.f32 %v2041_v45, %v1577_v63  ;;  %v1628_v5 = vmax.f32 %v1586_v61, 0.0 }
 0x57d   : > { %v2267_v6 = vpop.f32.mrf.mxu1 }
 0x57e   : > { %v1626_v10 = vmax.f32 %v1578_v4, 0.0  ;;  %v1640_v18 = vpack.c.bf16 %v1628_v5, %v1627_v13  ;;  %v1599_v24 = vadd.f32 %v2267_v6, %v2041_v45 }
 0x57f   : > { %v1590_v15 = vpop.f32.mrf.mxu1 }
 0x580   : > { %v1639_v17 = vpack.c.bf16 %v1626_v10, %v1625_v9  ;;  %v1591_v21 = vadd.f32 %v2041_v45, %v1590_v15  ;;  %v1631_v22 = vmax.f32 %v1599_v24, 0.0 }
 0x581   : > { %v2268_v19 = vpop.f32.mrf.mxu1 }
 0x582   : > { %v1602_v23 = vadd.f32 %v2268_v19, %v2041_v45  ;;  %2293 = vmatprep.mubr.msk.bf16.mxu0 %vm1493_vm6, %v1639_v17  ;;  %v1629_v16 = vmax.f32 %v1591_v21, 0.0 }
 0x583   : > { %v1593_v25 = vpop.f32.mrf.mxu1  ;;  %2294 = vmatmul.mubr.msk.bf16.gmra.mxu0 %vm1493_vm6, %v1640_v18 }
 0x584   : > { %v1594_v27 = vadd.f32 %v2041_v45, %v1593_v25  ;;  %v1632_v29 = vmax.f32 %v1602_v23, 0.0 }
 0x585   : > { %v2271_v14 = vpop.f32.mrf.mxu1 }
 0x586   : > { %v1630_v20 = vmax.f32 %v1594_v27, 0.0  ;;  %v1642_v36 = vpack.c.bf16 %v1632_v29, %v1631_v22  ;;  %v1615_v37 = vadd.f32 %v2271_v14, %v2041_v45 }
 0x587   : > { %v1606_v30 = vpop.f32.mrf.mxu1 }
 0x588   : > { %v1641_v31 = vpack.c.bf16 %v1630_v20, %v1629_v16  ;;  %v1607_v28 = vadd.f32 %v2041_v45, %v1606_v30  ;;  %v1635_v41 = vmax.f32 %v1615_v37, 0.0 }
 0x589   : > { %v2272_v26 = vpop.f32.mrf.mxu1 }
 0x58a   : > { %v1618_v34 = vadd.f32 %v2272_v26, %v2041_v45  ;;  %2297 = vmatprep.mubr.msk.bf16.mxu0 %vm1493_vm6, %v1641_v31  ;;  %v1633_v40 = vmax.f32 %v1607_v28, 0.0 }
 0x58b   : > { %v1609_v38 = vpop.f32.mrf.mxu1  ;;  %2298 = vmatmul.mubr.msk.bf16.gmra.mxu0 %vm1493_vm6, %v1642_v36 }
 0x58c   : > { %v1610_v35 = vadd.f32 %v2041_v45, %v1609_v38  ;;  %v1636_v39 = vmax.f32 %v1618_v34, 0.0 }
 0x58e   : > { %v1634_v32 = vmax.f32 %v1610_v35, 0.0  ;;  %v1644_v0 = vpack.c.bf16 %v1636_v39, %v1635_v41 }
 0x590   : > { %v1643_v2 = vpack.c.bf16 %v1634_v32, %v1633_v40 }
 0x592   : > { %2301 = vmatprep.mubr.msk.bf16.mxu0 %vm1493_vm6, %v1643_v2 }
 0x593   : > { %2302 = vmatmul.mubr.msk.bf16.gmra.mxu0 %vm1493_vm6, %v1644_v0 }
 0x63b   : > { %v2291_v1 = vpop.f32.mrf.mxu0 }
 0x63c   : > { %v1799_v42 = vadd.f32 %v2291_v1, %v2052_v3 }
 0x63d   : > { %v1790_v43 = vpop.f32.mrf.mxu0 }
 0x63e   : > { %1855 = vst [vmem:[%s2814_s28 + $0x10] sm:$0xff] %v1799_v42  ;;  %v1791_v33 = vadd.f32 %v2052_v3, %v1790_v43 }
 0x63f   : > { %v2292_v44 = vpop.f32.mrf.mxu0 }
 0x640   : > { %1853 = vst [vmem:[%s2814_s28] sm:$0xff] %v1791_v33  ;;  %v1802_v8 = vadd.f32 %v2292_v44, %v2052_v3 }
 0x641   : > { %v1793_v7 = vpop.f32.mrf.mxu0 }
 0x642   : > { %1856 = vst [vmem:[%s2814_s28 + $0x18] sm:$0xff] %v1802_v8  ;;  %v1794_v12 = vadd.f32 %v2052_v3, %v1793_v7 }
 0x643   : > { %v2295_v45 = vpop.f32.mrf.mxu0 }
 0x644   : > { %1854 = vst [vmem:[%s2814_s28 + $0x8] sm:$0xff] %v1794_v12  ;;  %v1815_v46 = vadd.f32 %v2295_v45, %v2052_v3 }
 0x645   : > { %v1806_v11 = vpop.f32.mrf.mxu0 }
 0x646   : > { %1859 = vst [vmem:[%s2814_s28 + $0x30] sm:$0xff] %v1815_v46  ;;  %v1807_v47 = vadd.f32 %v2052_v3, %v1806_v11 }
 0x647   : > { %v2296_v48 = vpop.f32.mrf.mxu0 }
 0x648   : > { %1857 = vst [vmem:[%s2814_s28 + $0x20] sm:$0xff] %v1807_v47  ;;  %v1818_v49 = vadd.f32 %v2296_v48, %v2052_v3 }
 0x649   : > { %v1809_v50 = vpop.f32.mrf.mxu0 }
 0x64a   : > { %1860 = vst [vmem:[%s2814_s28 + $0x38] sm:$0xff] %v1818_v49  ;;  %v1810_v51 = vadd.f32 %v2052_v3, %v1809_v50 }
 0x64b   : > { %v2299_v52 = vpop.f32.mrf.mxu0 }
 0x64c   : > { %1858 = vst [vmem:[%s2814_s28 + $0x28] sm:$0xff] %v1810_v51  ;;  %v1831_v53 = vadd.f32 %v2299_v52, %v2052_v3 }
 0x64d   : > { %v1822_v54 = vpop.f32.mrf.mxu0 }
 0x64e   : > { %1863 = vst [vmem:[%s2814_s28 + $0x50] sm:$0xff] %v1831_v53  ;;  %v1823_v55 = vadd.f32 %v2052_v3, %v1822_v54 }
 0x64f   : > { %v2300_v56 = vpop.f32.mrf.mxu0 }
 0x650   : > { %1861 = vst [vmem:[%s2814_s28 + $0x40] sm:$0xff] %v1823_v55  ;;  %v1834_v57 = vadd.f32 %v2300_v56, %v2052_v3 }
 0x651   : > { %v1825_v58 = vpop.f32.mrf.mxu0 }
 0x652   : > { %1864 = vst [vmem:[%s2814_s28 + $0x58] sm:$0xff] %v1834_v57  ;;  %v1826_v59 = vadd.f32 %v2052_v3, %v1825_v58 }
 0x653   : > { %v2303_v60 = vpop.f32.mrf.mxu0 }
 0x654   : > { %1862 = vst [vmem:[%s2814_s28 + $0x48] sm:$0xff] %v1826_v59  ;;  %v1847_v61 = vadd.f32 %v2303_v60, %v2052_v3 }
 0x655   : > { %v1838_v62 = vpop.f32.mrf.mxu0 }
 0x656   : > { %1867 = vst [vmem:[%s2814_s28 + $0x70] sm:$0xff] %v1847_v61  ;;  %v1839_v63 = vadd.f32 %v2052_v3, %v1838_v62 }
 0x657   : > { %v2304_v4 = vpop.f32.mrf.mxu0 }
 0x658   : > { %1865 = vst [vmem:[%s2814_s28 + $0x60] sm:$0xff] %v1839_v63  ;;  %v1850_v5 = vadd.f32 %v2304_v4, %v2052_v3 }
 0x659   : > { %v1841_v6 = vpop.f32.mrf.mxu0 }
 0x65a   : > { %1868 = vst [vmem:[%s2814_s28 + $0x78] sm:$0xff] %v1850_v5  ;;  %v1842_v9 = vadd.f32 %v2052_v3, %v1841_v6 }
 0x65c   : > { %1866 = vst [vmem:[%s2814_s28 + $0x68] sm:$0xff] %v1842_v9 }
 0x65d   : > { %2581 = shalt.err (!%p2578_p7)
}
 0x65e   : > { %s2582_s28 = scalar_lea.hbm %s3325_s17, 2048  ;;  %s2586_s14 = scalar_lea.hbm %s3382_s9, 4096 }
 0x65f   : > { %p2583_p8 = scmp.ne.s32.totalorder %s3325_s17, %s2582_s28  ;;  %p2587_p11 = scmp.lt.s32.totalorder %s3325_s17, %s3382_s9 }
 0x660   : > { %p2588_p12 = scmp.lt.s32.totalorder %s2586_s14, %s2582_s28 }
 0x661   : > { %p2584_p9 = pnand %p2583_p8, %p2795_p5 }
 0x662   : > { %p2589_p13 = por %p2588_p12, %p2587_p11 }
 0x663   : > { %p2585_p10 = pneg %p2584_p9 }
 0x665   : > { %p2590_p0 = pnand %p2589_p13, %p2585_p10 }
 0x667   : > { %2593 = shalt.err (!%p2590_p0)
}
 0x668   : > { %s2705_s23 = smov 128   ;;  %s2706_s24 = smov 8  }
 0x669   : > { %2321 = dma.vmem_to_hbm [thread:$0]  (%p2795_p5), %s3327_s29, 2048, %s3325_s17, %s3333_s13, %s2705_s23, %s2705_s23, %s2706_s24  }
 0x66a PF: > { %p2327_p1 = scmp.ge.s32.totalorder %s2664_s12, 2  ;;  %s1898_s25 = sand.u32 1, %s2652_s30  }
 0x66b   : > { %s1899_s27 = scalar_lea.sflag [#allocation8], %s1898_s25 }
 0x66c   : > { %p2324_p2 = pnand %p2327_p1, %p2799_p6 }
 0x66e   : > { %p2325_p3 = pneg %p2324_p2 }
 0x670   : > { %2647 = dma.done.wait (%p2325_p3), %s1899_s27, 2048  }
 0x671   : > { %2649 = vsyncadd (%p2325_p3), %s1899_s27, 4294965248  ;;  %p19_p4 = scmp.ge.s32.totalorder %s2782_s15, 4   ;;  %s3395_s30 = smov %s2656_s10 }
 0x672   : > { %s3396_s10 = smov %s2660_s11  ;;  %s3397_s11 = smov %s2793_s18 }
 0x673   : > { %s3398_s12 = smov %s2782_s15  ;;  %21 = sbr.rel (!%p19_p4) target bundleno = 3 (0x3), region = 113 }
 0x678   :  { %1904 = vsyncpa [#allocation8], 1 }
 0x679   :  { %1906 = vsyncpa [#allocation8 + $0x1], 1 }

</bundles_post_ra>
